<compile_context>
chip_gen: v6e
topology: v6e:2x2x1
jax: 0.10.0
libtpu: 0.0.40
codegen_flags: <defaults>
</compile_context>

<pallas_src>
import numpy as np
import jax
import jax.numpy as jnp
from jax import lax
from jax.experimental import pallas as pl
from jax.experimental.pallas import tpu as pltpu

STOP = -1     # last tag index  (T - 1)
S_TAG = -2    # start tag index (T - 2)

_LANES = 128
_VMEM_BUDGET = 48 * 1024 * 1024      # sized for v7x's 64 MiB physical VMEM (with headroom)
_BACKTRACE_CHUNK = 8                 # decode rows per batched store (one sublane tile)


def _round_up(x, m):
    return (x + m - 1) // m * m


def _estimate_tile_vmem_bytes(S, T, tb):
    """Rough VMEM footprint (bytes) of one batch tile."""
    Tp = _round_up(T, 8)
    Sp = _round_up(S, 8)
    pot = 2 * S * Tp * tb * 4          # potentials block, double-buffered
    msk = 2 * S * 8 * tb * 4           # (S,1,tb) int32 mask block (sublane padded), double-buffered
    dec = 2 * Sp * tb * 4              # decode output block, double-buffered
    bp = S * Tp * tb * 4               # back-pointer scratch
    tmp = (Tp * Tp + 32 * Tp + 64) * tb * 4   # hoisted transitions broadcast + live temporaries
    return pot + msk + dec + bp + tmp


def _choose_batch_tile(B_pad, S, T):
    """Largest lane-dense batch tile that fits the VMEM budget, preferring >=2 grid steps
    (input pipelining + v7x megacore sharding)."""
    fitting = [tb for tb in (512, 384, 256, 128)
               if B_pad % tb == 0 and _estimate_tile_vmem_bytes(S, T, tb) <= _VMEM_BUDGET]
    multi = [tb for tb in fitting if B_pad // tb >= 2]
    if multi:
        return multi[0]
    if fitting:
        return fitting[0]
    # TODO(synk): for very long S even a 128-lane tile blows the budget; the right fix is a
    # two-pass structure (back-pointers streamed to/from HBM), not shrinking the batch tile.
    return 128


def _viterbi_kernel(pot_ref, trans_ref, mask_ref, dec_ref, bp_ref):
    S, T, B = pot_ref.shape            # B is the per-grid-step batch tile (lane axis)
    trans = trans_ref[...]             # (T, T)

    # ---- hoisted loop invariants (built once per grid step; never inside the loops) ----
    trans_b = jnp.broadcast_to(trans[:, :, None], (T, T, B))      # (T, T, B)
    iota_t = lax.broadcasted_iota(jnp.int32, (T, B), 0)           # (T, B)

    # partition0[j, b] = potentials[0, j, b] + transitions[S_TAG, j]
    # TODO(synk): torch indexes scores[0, 0, S_TAG, :].view(B, T, 1), which only type-checks
    # for B == 1; we implement the clearly intended per-batch initialization.
    part0 = pot_ref[0] + trans_b[T - 2]                           # (T, B)

    # ------------------------------ forward recurrence ------------------------------
    def fwd_body(idx, partition):
        # Fused max/argmax over the previous tag i:
        #   cand_i[j, b] = transitions[i, j] + partition[i, b]
        # The emission pot[idx, j, b] is constant in i, so it is added after the reduction.
        # Balanced pairwise tree: O(log T) dependency depth, independent compares fill the
        # 4 VALU slots.  Ties keep the lower-index operand (first-max, same as np.argmax).
        nodes = [(trans_b[i] + partition[i:i + 1, :], jnp.int32(i)) for i in range(T)]
        while len(nodes) > 1:
            nxt = []
            for a in range(0, len(nodes) - 1, 2):
                vl, il = nodes[a]
                vr, ir = nodes[a + 1]
                take = vr > vl
                nxt.append((jnp.where(take, vr, vl), jnp.where(take, ir, il)))
            if len(nodes) % 2:
                nxt.append(nodes[-1])
            nodes = nxt
        best, best_idx = nodes[0]                                  # (T, B) f32 / int32

        m = mask_ref[idx]                                          # (1, B) int32
        # current_back_pointer.masked_fill_(mask == 0, 0); robust to mask values not in {0,1}.
        bp_ref[idx - 1] = jnp.where(m != 0, best_idx, jnp.int32(0))
        # NOTE: like the torch reference, the partition is updated unconditionally at masked
        # steps (only the back-pointer is zeroed).
        return pot_ref[idx] + best

    fwd_unroll = True if S <= 32 else 8        # partial unroll for long sequences
    _ = lax.fori_loop(1, S, fwd_body, part0, unroll=fwd_unroll)

    # ------------------------------ backtrace (decode_indices) ------------------------------
    def gather_prev(bp_row, ptr):
        # bp_row[t, b] gathered at ptr[0, b] -> (1, B)
        onehot = (iota_t == ptr).astype(jnp.int32)
        return jnp.sum(bp_row * onehot, axis=0, keepdims=True)

    CH = _BACKTRACE_CHUNK
    zeros_row = jnp.zeros((1, B), jnp.int32)
    ptr = bp_ref[S - 2, T - 1:T, :]            # back_pointers[-1][:, STOP]  ->  (1, B)

    lc = (S - 1) // CH                         # last (possibly partial) chunk index
    A = CH * lc                                # first row of the last chunk

    # -- top (possibly partial) chunk: rows S-1 .. A, individual static stores --
    for r in range(S - 1, A - 1, -1):
        if r == S - 1:
            row = ptr
        elif r == 0:
            row = zeros_row                    # decode_indices[0] = zeros
        else:
            ptr = gather_prev(bp_ref[r - 1], ptr)
            row = ptr
        off = r - A
        dec_ref[lc, off:off + 1, :] = row

    # -- middle full chunks (chunk indices lc-1 .. 1): one aligned (CH, B) store per chunk --
    n_mid = max(lc - 1, 0)
    if n_mid > 0:
        def mid_body(c, ptr):
            ci = lc - 1 - c                    # chunk index, lc-1 down to 1
            base = CH * ci                     # first decode row of this chunk (>= CH)
            rows = [None] * CH
            for off in range(CH - 1, -1, -1):
                ptr = gather_prev(bp_ref[base + off - 1], ptr)
                rows[off] = ptr
            dec_ref[ci] = jnp.concatenate(rows, axis=0)
            return ptr

        ptr = lax.fori_loop(0, n_mid, mid_body, ptr,
                            unroll=True if n_mid <= 2 else 2)

    # -- bottom chunk (rows 0 .. CH-1; row 0 is the leading zeros entry) --
    if lc >= 1:
        rows = [None] * CH
        for off in range(CH - 1, 0, -1):
            ptr = gather_prev(bp_ref[off - 1], ptr)
            rows[off] = ptr
        rows[0] = zeros_row
        dec_ref[0] = jnp.concatenate(rows, axis=0)


def crf_viterbi_decode(potentials, transitions, mask=None):
    """Equivalent of ConditionalRandomField.forward -> (path_score, best_path)."""
    B, S, T = potentials.shape
    if S < 2:
        raise ValueError("Viterbi decode needs seq_len >= 2 (the original PyTorch module "
                         "also fails for seq_len == 1: back_pointers[-1] on an empty list).")
    if mask is None:
        # TODO(synk): the original forward() never supplies a mask (it calls _viterbi_decode
        # with one argument); default to all-ones, arbitrary masks are supported.
        mask = jnp.ones((B, S), dtype=jnp.int32)

    CH = _BACKTRACE_CHUNK
    n_chunks = (S + CH - 1) // CH

    # Batch goes on the 128-lane axis; pad it to a lane multiple so every tile is lane-dense
    # (no whole-batch fallback tile, multi-step grid whenever B allows).
    B_pad = _round_up(B, _LANES)

    # TODO(synk): this transpose/pad is ~2 extra HBM passes over `potentials`; ideally the
    # producer emits (S, T, B) float32 directly. allow_input_fusion below lets XLA fuse the
    # relayout into the pallas_call operand when it can.
    pot_t = jnp.transpose(potentials, (1, 2, 0)).astype(jnp.float32)        # (S, T, B)
    mask_t = jnp.transpose(mask.astype(jnp.int32), (1, 0))[:, None, :]      # (S, 1, B)
    if B_pad != B:
        pot_t = jnp.pad(pot_t, ((0, 0), (0, 0), (0, B_pad - B)))
        mask_t = jnp.pad(mask_t, ((0, 0), (0, 0), (0, B_pad - B)), constant_values=1)

    TB = _choose_batch_tile(B_pad, S, T)
    grid = (B_pad // TB,)
    vmem_limit = int(min(max(_estimate_tile_vmem_bytes(S, T, TB) + (4 << 20), 32 << 20),
                         56 << 20))

    dec = pl.pallas_call(
        _viterbi_kernel,
        out_shape=jax.ShapeDtypeStruct((n_chunks, CH, B_pad), jnp.int32),
        grid_spec=pltpu.PrefetchScalarGridSpec(
            num_scalar_prefetch=0,
            grid=grid,
            in_specs=[pl.BlockSpec((S, T, TB), lambda b: (0, 0, b)),
                      pl.BlockSpec((T, T), lambda b: (0, 0)),
                      pl.BlockSpec((S, 1, TB), lambda b: (0, 0, b))],
            out_specs=pl.BlockSpec((n_chunks, CH, TB), lambda b: (0, 0, b)),
            scratch_shapes=[pltpu.VMEM((S - 1, T, TB), jnp.int32)],   # back-pointer buffer
        ),
        compiler_params=pltpu.CompilerParams(
            dimension_semantics=("parallel",),
            vmem_limit_bytes=vmem_limit,
            allow_input_fusion=[True, False, True],
        ),
    )(pot_t, transitions.astype(jnp.float32), mask_t)

    dec_flat = dec.reshape(n_chunks * CH, B_pad)[:S, :B]
    best_path = jnp.transpose(dec_flat, (1, 0))                            # (B, S) int32
    # TODO(synk): the torch module returns path_score = None (no score is computed).
    return None, best_path


def _viterbi_ref(potentials, transitions, mask):
    """Plain-NumPy reference of the intended _viterbi_decode semantics."""
    B, S, T = potentials.shape
    scores = potentials[:, :, None, :] + transitions[None, None, :, :]      # (B,S,T,T)
    partition = scores[:, 0, T - 2, :]                                      # (B, T)
    bps = []
    for idx in range(1, S):
        cv = scores[:, idx, :, :] + partition[:, :, None]
        partition = cv.max(axis=1)
        bp = cv.argmax(axis=1).astype(np.int32)
        bp = np.where(mask[:, idx][:, None] > 0, bp, 0)
        bps.append(bp)
    dec = [np.zeros((B,), np.int32)]
    pointer = bps[-1][:, T - 1]
    dec.append(pointer)
    for idx in range(len(bps) - 2, -1, -1):
        pointer = np.take_along_axis(bps[idx], pointer[:, None].astype(np.int64), axis=1)[:, 0]
        dec.insert(1, pointer)
    return np.stack(dec, axis=1).astype(np.int32)


if __name__ == "__main__":
    root_key = jax.random.PRNGKey(0)

    def run_case(key, B, S, num_tags, random_mask=False):
        T = num_tags + 2
        k1, k2, k3 = jax.random.split(key, 3)
        potentials = jax.random.normal(k1, (B, S, T), dtype=jnp.float32)
        # nn.Parameter(torch.zeros(T, T)) in the module; use small deterministic values here
        # so the decode path is nontrivial (still deterministic from PRNGKey(0)).
        transitions = 0.1 * jax.random.normal(k2, (T, T), dtype=jnp.float32)
        if random_mask:
            mask = jax.random.bernoulli(k3, 0.7, (B, S)).astype(jnp.int32)
            mask = mask.at[:, 0].set(1)
        else:
            mask = jnp.ones((B, S), dtype=jnp.int32)

        path_score, best_path = crf_viterbi_decode(potentials, transitions, mask)
        best_path = jax.block_until_ready(best_path)

        ref = _viterbi_ref(np.asarray(potentials), np.asarray(transitions), np.asarray(mask))
        assert np.array_equal(np.asarray(best_path), ref), (B, S, T)
        assert path_score is None

    keys = jax.random.split(root_key, 4)
    # module-sized small case (batch=2, seq=8, num_tags=6 -> T=8)
    run_case(keys[0], B=2, S=8, num_tags=6)
    # longer sequence: exercises partial unroll + chunked backtrace stores
    run_case(keys[1], B=3, S=40, num_tags=6, random_mask=True)
    # minimum supported sequence length
    run_case(keys[2], B=2, S=2, num_tags=6)
    # multi-tile batch grid (2 x 128-lane tiles) with a nontrivial mask
    run_case(keys[3], B=256, S=16, num_tags=6, random_mask=True)

    print("KERNEL_OK")
</pallas_src>

<mosaic_0001>
module attributes {stable_mosaic.version = 11 : i64} {
  func.func @_viterbi_kernel(%arg0: i32, %arg1: memref<8x8x128xf32, #tpu.memory_space<vmem>>, %arg2: memref<8x8xf32, #tpu.memory_space<vmem>>, %arg3: memref<8x1x128xi32, #tpu.memory_space<vmem>>, %arg4: memref<1x8x128xi32, #tpu.memory_space<vmem>>, %arg5: memref<7x8x128xi32, #tpu.memory_space<vmem>>) attributes {dimension_semantics = [#tpu.dimension_semantics<parallel>], iteration_bounds = array<i64: 1>, scalar_prefetch = 0 : i64, scratch_operands = 1 : i64, tpu.core_type = #tpu.core_type<tc>, window_params = [{transform_indices = @transform_0, window_bounds = array<i64: 8, 8, 128>}, {pipeline_mode = #tpu.pipeline_mode<synchronous>, transform_indices = @transform_1, window_bounds = array<i64: 8, 8>}, {transform_indices = @transform_2, window_bounds = array<i64: 8, 1, 128>}, {transform_indices = @transform_3, window_bounds = array<i64: 1, 8, 128>}]} {
    %c0 = arith.constant 0 : index
    %c0_0 = arith.constant 0 : index
    %0 = vector.load %arg2[%c0, %c0_0] : memref<8x8xf32, #tpu.memory_space<vmem>>, vector<8x8xf32>
    %1 = vector.shape_cast %0 : vector<8x8xf32> to vector<8x8x1xf32>
    %2 = vector.shape_cast %1 : vector<8x8x1xf32> to vector<8x8x1xf32>
    %3 = vector.broadcast %2 : vector<8x8x1xf32> to vector<8x8x128xf32>
    %4 = tpu.iota {dimensions = array<i32: 0>} : vector<8x128xi32>
    %c0_1 = arith.constant 0 : index
    %c0_2 = arith.constant 0 : index
    %c0_3 = arith.constant 0 : index
    %5 = vector.load %arg1[%c0_1, %c0_2, %c0_3] : memref<8x8x128xf32, #tpu.memory_space<vmem>>, vector<1x8x128xf32>
    %6 = vector.shape_cast %5 : vector<1x8x128xf32> to vector<8x128xf32>
    %7 = vector.extract_strided_slice %3 {offsets = [6, 0, 0], sizes = [1, 8, 128], strides = [1, 1, 1]} : vector<8x8x128xf32> to vector<1x8x128xf32>
    %8 = vector.shape_cast %7 : vector<1x8x128xf32> to vector<8x128xf32>
    %9 = arith.addf %6, %8 : vector<8x128xf32>
    %c1_i32 = arith.constant 1 : i32
    %10 = vector.extract_strided_slice %3 {offsets = [0, 0, 0], sizes = [1, 8, 128], strides = [1, 1, 1]} : vector<8x8x128xf32> to vector<1x8x128xf32>
    %11 = vector.shape_cast %10 : vector<1x8x128xf32> to vector<8x128xf32>
    %12 = vector.extract_strided_slice %9 {offsets = [0, 0], sizes = [1, 128], strides = [1, 1]} : vector<8x128xf32> to vector<1x128xf32>
    %13 = vector.broadcast %12 : vector<1x128xf32> to vector<8x128xf32>
    %14 = arith.addf %11, %13 : vector<8x128xf32>
    %15 = vector.extract_strided_slice %3 {offsets = [1, 0, 0], sizes = [1, 8, 128], strides = [1, 1, 1]} : vector<8x8x128xf32> to vector<1x8x128xf32>
    %16 = vector.shape_cast %15 : vector<1x8x128xf32> to vector<8x128xf32>
    %17 = vector.extract_strided_slice %9 {offsets = [1, 0], sizes = [1, 128], strides = [1, 1]} : vector<8x128xf32> to vector<1x128xf32>
    %18 = vector.broadcast %17 : vector<1x128xf32> to vector<8x128xf32>
    %19 = arith.addf %16, %18 : vector<8x128xf32>
    %20 = vector.extract_strided_slice %3 {offsets = [2, 0, 0], sizes = [1, 8, 128], strides = [1, 1, 1]} : vector<8x8x128xf32> to vector<1x8x128xf32>
    %21 = vector.shape_cast %20 : vector<1x8x128xf32> to vector<8x128xf32>
    %22 = vector.extract_strided_slice %9 {offsets = [2, 0], sizes = [1, 128], strides = [1, 1]} : vector<8x128xf32> to vector<1x128xf32>
    %23 = vector.broadcast %22 : vector<1x128xf32> to vector<8x128xf32>
    %24 = arith.addf %21, %23 : vector<8x128xf32>
    %25 = vector.extract_strided_slice %3 {offsets = [3, 0, 0], sizes = [1, 8, 128], strides = [1, 1, 1]} : vector<8x8x128xf32> to vector<1x8x128xf32>
    %26 = vector.shape_cast %25 : vector<1x8x128xf32> to vector<8x128xf32>
    %27 = vector.extract_strided_slice %9 {offsets = [3, 0], sizes = [1, 128], strides = [1, 1]} : vector<8x128xf32> to vector<1x128xf32>
    %28 = vector.broadcast %27 : vector<1x128xf32> to vector<8x128xf32>
    %29 = arith.addf %26, %28 : vector<8x128xf32>
    %30 = vector.extract_strided_slice %3 {offsets = [4, 0, 0], sizes = [1, 8, 128], strides = [1, 1, 1]} : vector<8x8x128xf32> to vector<1x8x128xf32>
    %31 = vector.shape_cast %30 : vector<1x8x128xf32> to vector<8x128xf32>
    %32 = vector.extract_strided_slice %9 {offsets = [4, 0], sizes = [1, 128], strides = [1, 1]} : vector<8x128xf32> to vector<1x128xf32>
    %33 = vector.broadcast %32 : vector<1x128xf32> to vector<8x128xf32>
    %34 = arith.addf %31, %33 : vector<8x128xf32>
    %35 = vector.extract_strided_slice %3 {offsets = [5, 0, 0], sizes = [1, 8, 128], strides = [1, 1, 1]} : vector<8x8x128xf32> to vector<1x8x128xf32>
    %36 = vector.shape_cast %35 : vector<1x8x128xf32> to vector<8x128xf32>
    %37 = vector.extract_strided_slice %9 {offsets = [5, 0], sizes = [1, 128], strides = [1, 1]} : vector<8x128xf32> to vector<1x128xf32>
    %38 = vector.broadcast %37 : vector<1x128xf32> to vector<8x128xf32>
    %39 = arith.addf %36, %38 : vector<8x128xf32>
    %40 = vector.extract_strided_slice %3 {offsets = [6, 0, 0], sizes = [1, 8, 128], strides = [1, 1, 1]} : vector<8x8x128xf32> to vector<1x8x128xf32>
    %41 = vector.shape_cast %40 : vector<1x8x128xf32> to vector<8x128xf32>
    %42 = vector.extract_strided_slice %9 {offsets = [6, 0], sizes = [1, 128], strides = [1, 1]} : vector<8x128xf32> to vector<1x128xf32>
    %43 = vector.broadcast %42 : vector<1x128xf32> to vector<8x128xf32>
    %44 = arith.addf %41, %43 : vector<8x128xf32>
    %45 = vector.extract_strided_slice %3 {offsets = [7, 0, 0], sizes = [1, 8, 128], strides = [1, 1, 1]} : vector<8x8x128xf32> to vector<1x8x128xf32>
    %46 = vector.shape_cast %45 : vector<1x8x128xf32> to vector<8x128xf32>
    %47 = vector.extract_strided_slice %9 {offsets = [7, 0], sizes = [1, 128], strides = [1, 1]} : vector<8x128xf32> to vector<1x128xf32>
    %48 = vector.broadcast %47 : vector<1x128xf32> to vector<8x128xf32>
    %49 = arith.addf %46, %48 : vector<8x128xf32>
    %50 = arith.cmpf ogt, %19, %14 : vector<8x128xf32>
    %51 = arith.select %50, %19, %14 : vector<8x128xi1>, vector<8x128xf32>
    %c1_i32_4 = arith.constant 1 : i32
    %c0_i32 = arith.constant 0 : i32
    %52 = vector.broadcast %c1_i32_4 : i32 to vector<8x128xi32>
    %53 = vector.broadcast %c0_i32 : i32 to vector<8x128xi32>
    %54 = arith.select %50, %52, %53 : vector<8x128xi1>, vector<8x128xi32>
    %55 = arith.cmpf ogt, %29, %24 : vector<8x128xf32>
    %56 = arith.select %55, %29, %24 : vector<8x128xi1>, vector<8x128xf32>
    %c3_i32 = arith.constant 3 : i32
    %c2_i32 = arith.constant 2 : i32
    %57 = vector.broadcast %c3_i32 : i32 to vector<8x128xi32>
    %58 = vector.broadcast %c2_i32 : i32 to vector<8x128xi32>
    %59 = arith.select %55, %57, %58 : vector<8x128xi1>, vector<8x128xi32>
    %60 = arith.cmpf ogt, %39, %34 : vector<8x128xf32>
    %61 = arith.select %60, %39, %34 : vector<8x128xi1>, vector<8x128xf32>
    %c5_i32 = arith.constant 5 : i32
    %c4_i32 = arith.constant 4 : i32
    %62 = vector.broadcast %c5_i32 : i32 to vector<8x128xi32>
    %63 = vector.broadcast %c4_i32 : i32 to vector<8x128xi32>
    %64 = arith.select %60, %62, %63 : vector<8x128xi1>, vector<8x128xi32>
    %65 = arith.cmpf ogt, %49, %44 : vector<8x128xf32>
    %66 = arith.select %65, %49, %44 : vector<8x128xi1>, vector<8x128xf32>
    %c7_i32 = arith.constant 7 : i32
    %c6_i32 = arith.constant 6 : i32
    %67 = vector.broadcast %c7_i32 : i32 to vector<8x128xi32>
    %68 = vector.broadcast %c6_i32 : i32 to vector<8x128xi32>
    %69 = arith.select %65, %67, %68 : vector<8x128xi1>, vector<8x128xi32>
    %70 = arith.cmpf ogt, %56, %51 : vector<8x128xf32>
    %71 = arith.select %70, %56, %51 : vector<8x128xi1>, vector<8x128xf32>
    %72 = arith.select %70, %59, %54 : vector<8x128xi1>, vector<8x128xi32>
    %73 = arith.cmpf ogt, %66, %61 : vector<8x128xf32>
    %74 = arith.select %73, %66, %61 : vector<8x128xi1>, vector<8x128xf32>
    %75 = arith.select %73, %69, %64 : vector<8x128xi1>, vector<8x128xi32>
    %76 = arith.cmpf ogt, %74, %71 : vector<8x128xf32>
    %77 = arith.select %76, %74, %71 : vector<8x128xi1>, vector<8x128xf32>
    %78 = arith.select %76, %75, %72 : vector<8x128xi1>, vector<8x128xi32>
    %79 = arith.index_cast %c1_i32 : i32 to index
    %c0_5 = arith.constant 0 : index
    %c0_6 = arith.constant 0 : index
    %80 = vector.load %arg3[%79, %c0_5, %c0_6] : memref<8x1x128xi32, #tpu.memory_space<vmem>>, vector<1x1x128xi32>
    %81 = vector.shape_cast %80 : vector<1x1x128xi32> to vector<1x128xi32>
    %c0_i32_7 = arith.constant 0 : i32
    %82 = vector.broadcast %c0_i32_7 : i32 to vector<1x128xi32>
    %83 = arith.cmpi ne, %81, %82 : vector<1x128xi32>
    %c0_i32_8 = arith.constant 0 : i32
    %84 = vector.shape_cast %83 : vector<1x128xi1> to vector<1x128xi1>
    %85 = vector.broadcast %84 : vector<1x128xi1> to vector<8x128xi1>
    %86 = vector.broadcast %c0_i32_8 : i32 to vector<8x128xi32>
    %87 = arith.select %85, %78, %86 : vector<8x128xi1>, vector<8x128xi32>
    %c1_i32_9 = arith.constant 1 : i32
    %88 = arith.subi %c1_i32, %c1_i32_9 : i32
    %89 = arith.index_cast %88 : i32 to index
    %c0_10 = arith.constant 0 : index
    %c0_11 = arith.constant 0 : index
    %90 = vector.load %arg5[%89, %c0_10, %c0_11] : memref<7x8x128xi32, #tpu.memory_space<vmem>>, vector<1x8x128xi32>
    %91 = vector.shape_cast %90 : vector<1x8x128xi32> to vector<8x128xi32>
    %92 = vector.shape_cast %87 : vector<8x128xi32> to vector<1x8x128xi32>
    tpu.vector_store %arg5[%89, %c0_10, %c0_11], %92 {strides = array<i32>} : memref<7x8x128xi32, #tpu.memory_space<vmem>>, vector<1x8x128xi32>,
    %93 = arith.index_cast %c1_i32 : i32 to index
    %c0_12 = arith.constant 0 : index
    %c0_13 = arith.constant 0 : index
    %94 = vector.load %arg1[%93, %c0_12, %c0_13] : memref<8x8x128xf32, #tpu.memory_space<vmem>>, vector<1x8x128xf32>
    %95 = vector.shape_cast %94 : vector<1x8x128xf32> to vector<8x128xf32>
    %96 = arith.addf %95, %77 : vector<8x128xf32>
    %c2_i32_14 = arith.constant 2 : i32
    %97 = vector.extract_strided_slice %3 {offsets = [0, 0, 0], sizes = [1, 8, 128], strides = [1, 1, 1]} : vector<8x8x128xf32> to vector<1x8x128xf32>
    %98 = vector.shape_cast %97 : vector<1x8x128xf32> to vector<8x128xf32>
    %99 = vector.extract_strided_slice %96 {offsets = [0, 0], sizes = [1, 128], strides = [1, 1]} : vector<8x128xf32> to vector<1x128xf32>
    %100 = vector.broadcast %99 : vector<1x128xf32> to vector<8x128xf32>
    %101 = arith.addf %98, %100 : vector<8x128xf32>
    %102 = vector.extract_strided_slice %3 {offsets = [1, 0, 0], sizes = [1, 8, 128], strides = [1, 1, 1]} : vector<8x8x128xf32> to vector<1x8x128xf32>
    %103 = vector.shape_cast %102 : vector<1x8x128xf32> to vector<8x128xf32>
    %104 = vector.extract_strided_slice %96 {offsets = [1, 0], sizes = [1, 128], strides = [1, 1]} : vector<8x128xf32> to vector<1x128xf32>
    %105 = vector.broadcast %104 : vector<1x128xf32> to vector<8x128xf32>
    %106 = arith.addf %103, %105 : vector<8x128xf32>
    %107 = vector.extract_strided_slice %3 {offsets = [2, 0, 0], sizes = [1, 8, 128], strides = [1, 1, 1]} : vector<8x8x128xf32> to vector<1x8x128xf32>
    %108 = vector.shape_cast %107 : vector<1x8x128xf32> to vector<8x128xf32>
    %109 = vector.extract_strided_slice %96 {offsets = [2, 0], sizes = [1, 128], strides = [1, 1]} : vector<8x128xf32> to vector<1x128xf32>
    %110 = vector.broadcast %109 : vector<1x128xf32> to vector<8x128xf32>
    %111 = arith.addf %108, %110 : vector<8x128xf32>
    %112 = vector.extract_strided_slice %3 {offsets = [3, 0, 0], sizes = [1, 8, 128], strides = [1, 1, 1]} : vector<8x8x128xf32> to vector<1x8x128xf32>
    %113 = vector.shape_cast %112 : vector<1x8x128xf32> to vector<8x128xf32>
    %114 = vector.extract_strided_slice %96 {offsets = [3, 0], sizes = [1, 128], strides = [1, 1]} : vector<8x128xf32> to vector<1x128xf32>
    %115 = vector.broadcast %114 : vector<1x128xf32> to vector<8x128xf32>
    %116 = arith.addf %113, %115 : vector<8x128xf32>
    %117 = vector.extract_strided_slice %3 {offsets = [4, 0, 0], sizes = [1, 8, 128], strides = [1, 1, 1]} : vector<8x8x128xf32> to vector<1x8x128xf32>
    %118 = vector.shape_cast %117 : vector<1x8x128xf32> to vector<8x128xf32>
    %119 = vector.extract_strided_slice %96 {offsets = [4, 0], sizes = [1, 128], strides = [1, 1]} : vector<8x128xf32> to vector<1x128xf32>
    %120 = vector.broadcast %119 : vector<1x128xf32> to vector<8x128xf32>
    %121 = arith.addf %118, %120 : vector<8x128xf32>
    %122 = vector.extract_strided_slice %3 {offsets = [5, 0, 0], sizes = [1, 8, 128], strides = [1, 1, 1]} : vector<8x8x128xf32> to vector<1x8x128xf32>
    %123 = vector.shape_cast %122 : vector<1x8x128xf32> to vector<8x128xf32>
    %124 = vector.extract_strided_slice %96 {offsets = [5, 0], sizes = [1, 128], strides = [1, 1]} : vector<8x128xf32> to vector<1x128xf32>
    %125 = vector.broadcast %124 : vector<1x128xf32> to vector<8x128xf32>
    %126 = arith.addf %123, %125 : vector<8x128xf32>
    %127 = vector.extract_strided_slice %3 {offsets = [6, 0, 0], sizes = [1, 8, 128], strides = [1, 1, 1]} : vector<8x8x128xf32> to vector<1x8x128xf32>
    %128 = vector.shape_cast %127 : vector<1x8x128xf32> to vector<8x128xf32>
    %129 = vector.extract_strided_slice %96 {offsets = [6, 0], sizes = [1, 128], strides = [1, 1]} : vector<8x128xf32> to vector<1x128xf32>
    %130 = vector.broadcast %129 : vector<1x128xf32> to vector<8x128xf32>
    %131 = arith.addf %128, %130 : vector<8x128xf32>
    %132 = vector.extract_strided_slice %3 {offsets = [7, 0, 0], sizes = [1, 8, 128], strides = [1, 1, 1]} : vector<8x8x128xf32> to vector<1x8x128xf32>
    %133 = vector.shape_cast %132 : vector<1x8x128xf32> to vector<8x128xf32>
    %134 = vector.extract_strided_slice %96 {offsets = [7, 0], sizes = [1, 128], strides = [1, 1]} : vector<8x128xf32> to vector<1x128xf32>
    %135 = vector.broadcast %134 : vector<1x128xf32> to vector<8x128xf32>
    %136 = arith.addf %133, %135 : vector<8x128xf32>
    %137 = arith.cmpf ogt, %106, %101 : vector<8x128xf32>
    %138 = arith.select %137, %106, %101 : vector<8x128xi1>, vector<8x128xf32>
    %c1_i32_15 = arith.constant 1 : i32
    %c0_i32_16 = arith.constant 0 : i32
    %139 = vector.broadcast %c1_i32_15 : i32 to vector<8x128xi32>
    %140 = vector.broadcast %c0_i32_16 : i32 to vector<8x128xi32>
    %141 = arith.select %137, %139, %140 : vector<8x128xi1>, vector<8x128xi32>
    %142 = arith.cmpf ogt, %116, %111 : vector<8x128xf32>
    %143 = arith.select %142, %116, %111 : vector<8x128xi1>, vector<8x128xf32>
    %c3_i32_17 = arith.constant 3 : i32
    %c2_i32_18 = arith.constant 2 : i32
    %144 = vector.broadcast %c3_i32_17 : i32 to vector<8x128xi32>
    %145 = vector.broadcast %c2_i32_18 : i32 to vector<8x128xi32>
    %146 = arith.select %142, %144, %145 : vector<8x128xi1>, vector<8x128xi32>
    %147 = arith.cmpf ogt, %126, %121 : vector<8x128xf32>
    %148 = arith.select %147, %126, %121 : vector<8x128xi1>, vector<8x128xf32>
    %c5_i32_19 = arith.constant 5 : i32
    %c4_i32_20 = arith.constant 4 : i32
    %149 = vector.broadcast %c5_i32_19 : i32 to vector<8x128xi32>
    %150 = vector.broadcast %c4_i32_20 : i32 to vector<8x128xi32>
    %151 = arith.select %147, %149, %150 : vector<8x128xi1>, vector<8x128xi32>
    %152 = arith.cmpf ogt, %136, %131 : vector<8x128xf32>
    %153 = arith.select %152, %136, %131 : vector<8x128xi1>, vector<8x128xf32>
    %c7_i32_21 = arith.constant 7 : i32
    %c6_i32_22 = arith.constant 6 : i32
    %154 = vector.broadcast %c7_i32_21 : i32 to vector<8x128xi32>
    %155 = vector.broadcast %c6_i32_22 : i32 to vector<8x128xi32>
    %156 = arith.select %152, %154, %155 : vector<8x128xi1>, vector<8x128xi32>
    %157 = arith.cmpf ogt, %143, %138 : vector<8x128xf32>
    %158 = arith.select %157, %143, %138 : vector<8x128xi1>, vector<8x128xf32>
    %159 = arith.select %157, %146, %141 : vector<8x128xi1>, vector<8x128xi32>
    %160 = arith.cmpf ogt, %153, %148 : vector<8x128xf32>
    %161 = arith.select %160, %153, %148 : vector<8x128xi1>, vector<8x128xf32>
    %162 = arith.select %160, %156, %151 : vector<8x128xi1>, vector<8x128xi32>
    %163 = arith.cmpf ogt, %161, %158 : vector<8x128xf32>
    %164 = arith.select %163, %161, %158 : vector<8x128xi1>, vector<8x128xf32>
    %165 = arith.select %163, %162, %159 : vector<8x128xi1>, vector<8x128xi32>
    %166 = arith.index_cast %c2_i32_14 : i32 to index
    %c0_23 = arith.constant 0 : index
    %c0_24 = arith.constant 0 : index
    %167 = vector.load %arg3[%166, %c0_23, %c0_24] : memref<8x1x128xi32, #tpu.memory_space<vmem>>, vector<1x1x128xi32>
    %168 = vector.shape_cast %167 : vector<1x1x128xi32> to vector<1x128xi32>
    %c0_i32_25 = arith.constant 0 : i32
    %169 = vector.broadcast %c0_i32_25 : i32 to vector<1x128xi32>
    %170 = arith.cmpi ne, %168, %169 : vector<1x128xi32>
    %c0_i32_26 = arith.constant 0 : i32
    %171 = vector.shape_cast %170 : vector<1x128xi1> to vector<1x128xi1>
    %172 = vector.broadcast %171 : vector<1x128xi1> to vector<8x128xi1>
    %173 = vector.broadcast %c0_i32_26 : i32 to vector<8x128xi32>
    %174 = arith.select %172, %165, %173 : vector<8x128xi1>, vector<8x128xi32>
    %c1_i32_27 = arith.constant 1 : i32
    %175 = arith.subi %c2_i32_14, %c1_i32_27 : i32
    %176 = arith.index_cast %175 : i32 to index
    %c0_28 = arith.constant 0 : index
    %c0_29 = arith.constant 0 : index
    %177 = vector.load %arg5[%176, %c0_28, %c0_29] : memref<7x8x128xi32, #tpu.memory_space<vmem>>, vector<1x8x128xi32>
    %178 = vector.shape_cast %177 : vector<1x8x128xi32> to vector<8x128xi32>
    %179 = vector.shape_cast %174 : vector<8x128xi32> to vector<1x8x128xi32>
    tpu.vector_store %arg5[%176, %c0_28, %c0_29], %179 {strides = array<i32>} : memref<7x8x128xi32, #tpu.memory_space<vmem>>, vector<1x8x128xi32>,
    %180 = arith.index_cast %c2_i32_14 : i32 to index
    %c0_30 = arith.constant 0 : index
    %c0_31 = arith.constant 0 : index
    %181 = vector.load %arg1[%180, %c0_30, %c0_31] : memref<8x8x128xf32, #tpu.memory_space<vmem>>, vector<1x8x128xf32>
    %182 = vector.shape_cast %181 : vector<1x8x128xf32> to vector<8x128xf32>
    %183 = arith.addf %182, %164 : vector<8x128xf32>
    %c3_i32_32 = arith.constant 3 : i32
    %184 = vector.extract_strided_slice %3 {offsets = [0, 0, 0], sizes = [1, 8, 128], strides = [1, 1, 1]} : vector<8x8x128xf32> to vector<1x8x128xf32>
    %185 = vector.shape_cast %184 : vector<1x8x128xf32> to vector<8x128xf32>
    %186 = vector.extract_strided_slice %183 {offsets = [0, 0], sizes = [1, 128], strides = [1, 1]} : vector<8x128xf32> to vector<1x128xf32>
    %187 = vector.broadcast %186 : vector<1x128xf32> to vector<8x128xf32>
    %188 = arith.addf %185, %187 : vector<8x128xf32>
    %189 = vector.extract_strided_slice %3 {offsets = [1, 0, 0], sizes = [1, 8, 128], strides = [1, 1, 1]} : vector<8x8x128xf32> to vector<1x8x128xf32>
    %190 = vector.shape_cast %189 : vector<1x8x128xf32> to vector<8x128xf32>
    %191 = vector.extract_strided_slice %183 {offsets = [1, 0], sizes = [1, 128], strides = [1, 1]} : vector<8x128xf32> to vector<1x128xf32>
    %192 = vector.broadcast %191 : vector<1x128xf32> to vector<8x128xf32>
    %193 = arith.addf %190, %192 : vector<8x128xf32>
    %194 = vector.extract_strided_slice %3 {offsets = [2, 0, 0], sizes = [1, 8, 128], strides = [1, 1, 1]} : vector<8x8x128xf32> to vector<1x8x128xf32>
    %195 = vector.shape_cast %194 : vector<1x8x128xf32> to vector<8x128xf32>
    %196 = vector.extract_strided_slice %183 {offsets = [2, 0], sizes = [1, 128], strides = [1, 1]} : vector<8x128xf32> to vector<1x128xf32>
    %197 = vector.broadcast %196 : vector<1x128xf32> to vector<8x128xf32>
    %198 = arith.addf %195, %197 : vector<8x128xf32>
    %199 = vector.extract_strided_slice %3 {offsets = [3, 0, 0], sizes = [1, 8, 128], strides = [1, 1, 1]} : vector<8x8x128xf32> to vector<1x8x128xf32>
    %200 = vector.shape_cast %199 : vector<1x8x128xf32> to vector<8x128xf32>
    %201 = vector.extract_strided_slice %183 {offsets = [3, 0], sizes = [1, 128], strides = [1, 1]} : vector<8x128xf32> to vector<1x128xf32>
    %202 = vector.broadcast %201 : vector<1x128xf32> to vector<8x128xf32>
    %203 = arith.addf %200, %202 : vector<8x128xf32>
    %204 = vector.extract_strided_slice %3 {offsets = [4, 0, 0], sizes = [1, 8, 128], strides = [1, 1, 1]} : vector<8x8x128xf32> to vector<1x8x128xf32>
    %205 = vector.shape_cast %204 : vector<1x8x128xf32> to vector<8x128xf32>
    %206 = vector.extract_strided_slice %183 {offsets = [4, 0], sizes = [1, 128], strides = [1, 1]} : vector<8x128xf32> to vector<1x128xf32>
    %207 = vector.broadcast %206 : vector<1x128xf32> to vector<8x128xf32>
    %208 = arith.addf %205, %207 : vector<8x128xf32>
    %209 = vector.extract_strided_slice %3 {offsets = [5, 0, 0], sizes = [1, 8, 128], strides = [1, 1, 1]} : vector<8x8x128xf32> to vector<1x8x128xf32>
    %210 = vector.shape_cast %209 : vector<1x8x128xf32> to vector<8x128xf32>
    %211 = vector.extract_strided_slice %183 {offsets = [5, 0], sizes = [1, 128], strides = [1, 1]} : vector<8x128xf32> to vector<1x128xf32>
    %212 = vector.broadcast %211 : vector<1x128xf32> to vector<8x128xf32>
    %213 = arith.addf %210, %212 : vector<8x128xf32>
    %214 = vector.extract_strided_slice %3 {offsets = [6, 0, 0], sizes = [1, 8, 128], strides = [1, 1, 1]} : vector<8x8x128xf32> to vector<1x8x128xf32>
    %215 = vector.shape_cast %214 : vector<1x8x128xf32> to vector<8x128xf32>
    %216 = vector.extract_strided_slice %183 {offsets = [6, 0], sizes = [1, 128], strides = [1, 1]} : vector<8x128xf32> to vector<1x128xf32>
    %217 = vector.broadcast %216 : vector<1x128xf32> to vector<8x128xf32>
    %218 = arith.addf %215, %217 : vector<8x128xf32>
    %219 = vector.extract_strided_slice %3 {offsets = [7, 0, 0], sizes = [1, 8, 128], strides = [1, 1, 1]} : vector<8x8x128xf32> to vector<1x8x128xf32>
    %220 = vector.shape_cast %219 : vector<1x8x128xf32> to vector<8x128xf32>
    %221 = vector.extract_strided_slice %183 {offsets = [7, 0], sizes = [1, 128], strides = [1, 1]} : vector<8x128xf32> to vector<1x128xf32>
    %222 = vector.broadcast %221 : vector<1x128xf32> to vector<8x128xf32>
    %223 = arith.addf %220, %222 : vector<8x128xf32>
    %224 = arith.cmpf ogt, %193, %188 : vector<8x128xf32>
    %225 = arith.select %224, %193, %188 : vector<8x128xi1>, vector<8x128xf32>
    %c1_i32_33 = arith.constant 1 : i32
    %c0_i32_34 = arith.constant 0 : i32
    %226 = vector.broadcast %c1_i32_33 : i32 to vector<8x128xi32>
    %227 = vector.broadcast %c0_i32_34 : i32 to vector<8x128xi32>
    %228 = arith.select %224, %226, %227 : vector<8x128xi1>, vector<8x128xi32>
    %229 = arith.cmpf ogt, %203, %198 : vector<8x128xf32>
    %230 = arith.select %229, %203, %198 : vector<8x128xi1>, vector<8x128xf32>
    %c3_i32_35 = arith.constant 3 : i32
    %c2_i32_36 = arith.constant 2 : i32
    %231 = vector.broadcast %c3_i32_35 : i32 to vector<8x128xi32>
    %232 = vector.broadcast %c2_i32_36 : i32 to vector<8x128xi32>
    %233 = arith.select %229, %231, %232 : vector<8x128xi1>, vector<8x128xi32>
    %234 = arith.cmpf ogt, %213, %208 : vector<8x128xf32>
    %235 = arith.select %234, %213, %208 : vector<8x128xi1>, vector<8x128xf32>
    %c5_i32_37 = arith.constant 5 : i32
    %c4_i32_38 = arith.constant 4 : i32
    %236 = vector.broadcast %c5_i32_37 : i32 to vector<8x128xi32>
    %237 = vector.broadcast %c4_i32_38 : i32 to vector<8x128xi32>
    %238 = arith.select %234, %236, %237 : vector<8x128xi1>, vector<8x128xi32>
    %239 = arith.cmpf ogt, %223, %218 : vector<8x128xf32>
    %240 = arith.select %239, %223, %218 : vector<8x128xi1>, vector<8x128xf32>
    %c7_i32_39 = arith.constant 7 : i32
    %c6_i32_40 = arith.constant 6 : i32
    %241 = vector.broadcast %c7_i32_39 : i32 to vector<8x128xi32>
    %242 = vector.broadcast %c6_i32_40 : i32 to vector<8x128xi32>
    %243 = arith.select %239, %241, %242 : vector<8x128xi1>, vector<8x128xi32>
    %244 = arith.cmpf ogt, %230, %225 : vector<8x128xf32>
    %245 = arith.select %244, %230, %225 : vector<8x128xi1>, vector<8x128xf32>
    %246 = arith.select %244, %233, %228 : vector<8x128xi1>, vector<8x128xi32>
    %247 = arith.cmpf ogt, %240, %235 : vector<8x128xf32>
    %248 = arith.select %247, %240, %235 : vector<8x128xi1>, vector<8x128xf32>
    %249 = arith.select %247, %243, %238 : vector<8x128xi1>, vector<8x128xi32>
    %250 = arith.cmpf ogt, %248, %245 : vector<8x128xf32>
    %251 = arith.select %250, %248, %245 : vector<8x128xi1>, vector<8x128xf32>
    %252 = arith.select %250, %249, %246 : vector<8x128xi1>, vector<8x128xi32>
    %253 = arith.index_cast %c3_i32_32 : i32 to index
    %c0_41 = arith.constant 0 : index
    %c0_42 = arith.constant 0 : index
    %254 = vector.load %arg3[%253, %c0_41, %c0_42] : memref<8x1x128xi32, #tpu.memory_space<vmem>>, vector<1x1x128xi32>
    %255 = vector.shape_cast %254 : vector<1x1x128xi32> to vector<1x128xi32>
    %c0_i32_43 = arith.constant 0 : i32
    %256 = vector.broadcast %c0_i32_43 : i32 to vector<1x128xi32>
    %257 = arith.cmpi ne, %255, %256 : vector<1x128xi32>
    %c0_i32_44 = arith.constant 0 : i32
    %258 = vector.shape_cast %257 : vector<1x128xi1> to vector<1x128xi1>
    %259 = vector.broadcast %258 : vector<1x128xi1> to vector<8x128xi1>
    %260 = vector.broadcast %c0_i32_44 : i32 to vector<8x128xi32>
    %261 = arith.select %259, %252, %260 : vector<8x128xi1>, vector<8x128xi32>
    %c1_i32_45 = arith.constant 1 : i32
    %262 = arith.subi %c3_i32_32, %c1_i32_45 : i32
    %263 = arith.index_cast %262 : i32 to index
    %c0_46 = arith.constant 0 : index
    %c0_47 = arith.constant 0 : index
    %264 = vector.load %arg5[%263, %c0_46, %c0_47] : memref<7x8x128xi32, #tpu.memory_space<vmem>>, vector<1x8x128xi32>
    %265 = vector.shape_cast %264 : vector<1x8x128xi32> to vector<8x128xi32>
    %266 = vector.shape_cast %261 : vector<8x128xi32> to vector<1x8x128xi32>
    tpu.vector_store %arg5[%263, %c0_46, %c0_47], %266 {strides = array<i32>} : memref<7x8x128xi32, #tpu.memory_space<vmem>>, vector<1x8x128xi32>,
    %267 = arith.index_cast %c3_i32_32 : i32 to index
    %c0_48 = arith.constant 0 : index
    %c0_49 = arith.constant 0 : index
    %268 = vector.load %arg1[%267, %c0_48, %c0_49] : memref<8x8x128xf32, #tpu.memory_space<vmem>>, vector<1x8x128xf32>
    %269 = vector.shape_cast %268 : vector<1x8x128xf32> to vector<8x128xf32>
    %270 = arith.addf %269, %251 : vector<8x128xf32>
    %c4_i32_50 = arith.constant 4 : i32
    %271 = vector.extract_strided_slice %3 {offsets = [0, 0, 0], sizes = [1, 8, 128], strides = [1, 1, 1]} : vector<8x8x128xf32> to vector<1x8x128xf32>
    %272 = vector.shape_cast %271 : vector<1x8x128xf32> to vector<8x128xf32>
    %273 = vector.extract_strided_slice %270 {offsets = [0, 0], sizes = [1, 128], strides = [1, 1]} : vector<8x128xf32> to vector<1x128xf32>
    %274 = vector.broadcast %273 : vector<1x128xf32> to vector<8x128xf32>
    %275 = arith.addf %272, %274 : vector<8x128xf32>
    %276 = vector.extract_strided_slice %3 {offsets = [1, 0, 0], sizes = [1, 8, 128], strides = [1, 1, 1]} : vector<8x8x128xf32> to vector<1x8x128xf32>
    %277 = vector.shape_cast %276 : vector<1x8x128xf32> to vector<8x128xf32>
    %278 = vector.extract_strided_slice %270 {offsets = [1, 0], sizes = [1, 128], strides = [1, 1]} : vector<8x128xf32> to vector<1x128xf32>
    %279 = vector.broadcast %278 : vector<1x128xf32> to vector<8x128xf32>
    %280 = arith.addf %277, %279 : vector<8x128xf32>
    %281 = vector.extract_strided_slice %3 {offsets = [2, 0, 0], sizes = [1, 8, 128], strides = [1, 1, 1]} : vector<8x8x128xf32> to vector<1x8x128xf32>
    %282 = vector.shape_cast %281 : vector<1x8x128xf32> to vector<8x128xf32>
    %283 = vector.extract_strided_slice %270 {offsets = [2, 0], sizes = [1, 128], strides = [1, 1]} : vector<8x128xf32> to vector<1x128xf32>
    %284 = vector.broadcast %283 : vector<1x128xf32> to vector<8x128xf32>
    %285 = arith.addf %282, %284 : vector<8x128xf32>
    %286 = vector.extract_strided_slice %3 {offsets = [3, 0, 0], sizes = [1, 8, 128], strides = [1, 1, 1]} : vector<8x8x128xf32> to vector<1x8x128xf32>
    %287 = vector.shape_cast %286 : vector<1x8x128xf32> to vector<8x128xf32>
    %288 = vector.extract_strided_slice %270 {offsets = [3, 0], sizes = [1, 128], strides = [1, 1]} : vector<8x128xf32> to vector<1x128xf32>
    %289 = vector.broadcast %288 : vector<1x128xf32> to vector<8x128xf32>
    %290 = arith.addf %287, %289 : vector<8x128xf32>
    %291 = vector.extract_strided_slice %3 {offsets = [4, 0, 0], sizes = [1, 8, 128], strides = [1, 1, 1]} : vector<8x8x128xf32> to vector<1x8x128xf32>
    %292 = vector.shape_cast %291 : vector<1x8x128xf32> to vector<8x128xf32>
    %293 = vector.extract_strided_slice %270 {offsets = [4, 0], sizes = [1, 128], strides = [1, 1]} : vector<8x128xf32> to vector<1x128xf32>
    %294 = vector.broadcast %293 : vector<1x128xf32> to vector<8x128xf32>
    %295 = arith.addf %292, %294 : vector<8x128xf32>
    %296 = vector.extract_strided_slice %3 {offsets = [5, 0, 0], sizes = [1, 8, 128], strides = [1, 1, 1]} : vector<8x8x128xf32> to vector<1x8x128xf32>
    %297 = vector.shape_cast %296 : vector<1x8x128xf32> to vector<8x128xf32>
    %298 = vector.extract_strided_slice %270 {offsets = [5, 0], sizes = [1, 128], strides = [1, 1]} : vector<8x128xf32> to vector<1x128xf32>
    %299 = vector.broadcast %298 : vector<1x128xf32> to vector<8x128xf32>
    %300 = arith.addf %297, %299 : vector<8x128xf32>
    %301 = vector.extract_strided_slice %3 {offsets = [6, 0, 0], sizes = [1, 8, 128], strides = [1, 1, 1]} : vector<8x8x128xf32> to vector<1x8x128xf32>
    %302 = vector.shape_cast %301 : vector<1x8x128xf32> to vector<8x128xf32>
    %303 = vector.extract_strided_slice %270 {offsets = [6, 0], sizes = [1, 128], strides = [1, 1]} : vector<8x128xf32> to vector<1x128xf32>
    %304 = vector.broadcast %303 : vector<1x128xf32> to vector<8x128xf32>
    %305 = arith.addf %302, %304 : vector<8x128xf32>
    %306 = vector.extract_strided_slice %3 {offsets = [7, 0, 0], sizes = [1, 8, 128], strides = [1, 1, 1]} : vector<8x8x128xf32> to vector<1x8x128xf32>
    %307 = vector.shape_cast %306 : vector<1x8x128xf32> to vector<8x128xf32>
    %308 = vector.extract_strided_slice %270 {offsets = [7, 0], sizes = [1, 128], strides = [1, 1]} : vector<8x128xf32> to vector<1x128xf32>
    %309 = vector.broadcast %308 : vector<1x128xf32> to vector<8x128xf32>
    %310 = arith.addf %307, %309 : vector<8x128xf32>
    %311 = arith.cmpf ogt, %280, %275 : vector<8x128xf32>
    %312 = arith.select %311, %280, %275 : vector<8x128xi1>, vector<8x128xf32>
    %c1_i32_51 = arith.constant 1 : i32
    %c0_i32_52 = arith.constant 0 : i32
    %313 = vector.broadcast %c1_i32_51 : i32 to vector<8x128xi32>
    %314 = vector.broadcast %c0_i32_52 : i32 to vector<8x128xi32>
    %315 = arith.select %311, %313, %314 : vector<8x128xi1>, vector<8x128xi32>
    %316 = arith.cmpf ogt, %290, %285 : vector<8x128xf32>
    %317 = arith.select %316, %290, %285 : vector<8x128xi1>, vector<8x128xf32>
    %c3_i32_53 = arith.constant 3 : i32
    %c2_i32_54 = arith.constant 2 : i32
    %318 = vector.broadcast %c3_i32_53 : i32 to vector<8x128xi32>
    %319 = vector.broadcast %c2_i32_54 : i32 to vector<8x128xi32>
    %320 = arith.select %316, %318, %319 : vector<8x128xi1>, vector<8x128xi32>
    %321 = arith.cmpf ogt, %300, %295 : vector<8x128xf32>
    %322 = arith.select %321, %300, %295 : vector<8x128xi1>, vector<8x128xf32>
    %c5_i32_55 = arith.constant 5 : i32
    %c4_i32_56 = arith.constant 4 : i32
    %323 = vector.broadcast %c5_i32_55 : i32 to vector<8x128xi32>
    %324 = vector.broadcast %c4_i32_56 : i32 to vector<8x128xi32>
    %325 = arith.select %321, %323, %324 : vector<8x128xi1>, vector<8x128xi32>
    %326 = arith.cmpf ogt, %310, %305 : vector<8x128xf32>
    %327 = arith.select %326, %310, %305 : vector<8x128xi1>, vector<8x128xf32>
    %c7_i32_57 = arith.constant 7 : i32
    %c6_i32_58 = arith.constant 6 : i32
    %328 = vector.broadcast %c7_i32_57 : i32 to vector<8x128xi32>
    %329 = vector.broadcast %c6_i32_58 : i32 to vector<8x128xi32>
    %330 = arith.select %326, %328, %329 : vector<8x128xi1>, vector<8x128xi32>
    %331 = arith.cmpf ogt, %317, %312 : vector<8x128xf32>
    %332 = arith.select %331, %317, %312 : vector<8x128xi1>, vector<8x128xf32>
    %333 = arith.select %331, %320, %315 : vector<8x128xi1>, vector<8x128xi32>
    %334 = arith.cmpf ogt, %327, %322 : vector<8x128xf32>
    %335 = arith.select %334, %327, %322 : vector<8x128xi1>, vector<8x128xf32>
    %336 = arith.select %334, %330, %325 : vector<8x128xi1>, vector<8x128xi32>
    %337 = arith.cmpf ogt, %335, %332 : vector<8x128xf32>
    %338 = arith.select %337, %335, %332 : vector<8x128xi1>, vector<8x128xf32>
    %339 = arith.select %337, %336, %333 : vector<8x128xi1>, vector<8x128xi32>
    %340 = arith.index_cast %c4_i32_50 : i32 to index
    %c0_59 = arith.constant 0 : index
    %c0_60 = arith.constant 0 : index
    %341 = vector.load %arg3[%340, %c0_59, %c0_60] : memref<8x1x128xi32, #tpu.memory_space<vmem>>, vector<1x1x128xi32>
    %342 = vector.shape_cast %341 : vector<1x1x128xi32> to vector<1x128xi32>
    %c0_i32_61 = arith.constant 0 : i32
    %343 = vector.broadcast %c0_i32_61 : i32 to vector<1x128xi32>
    %344 = arith.cmpi ne, %342, %343 : vector<1x128xi32>
    %c0_i32_62 = arith.constant 0 : i32
    %345 = vector.shape_cast %344 : vector<1x128xi1> to vector<1x128xi1>
    %346 = vector.broadcast %345 : vector<1x128xi1> to vector<8x128xi1>
    %347 = vector.broadcast %c0_i32_62 : i32 to vector<8x128xi32>
    %348 = arith.select %346, %339, %347 : vector<8x128xi1>, vector<8x128xi32>
    %c1_i32_63 = arith.constant 1 : i32
    %349 = arith.subi %c4_i32_50, %c1_i32_63 : i32
    %350 = arith.index_cast %349 : i32 to index
    %c0_64 = arith.constant 0 : index
    %c0_65 = arith.constant 0 : index
    %351 = vector.load %arg5[%350, %c0_64, %c0_65] : memref<7x8x128xi32, #tpu.memory_space<vmem>>, vector<1x8x128xi32>
    %352 = vector.shape_cast %351 : vector<1x8x128xi32> to vector<8x128xi32>
    %353 = vector.shape_cast %348 : vector<8x128xi32> to vector<1x8x128xi32>
    tpu.vector_store %arg5[%350, %c0_64, %c0_65], %353 {strides = array<i32>} : memref<7x8x128xi32, #tpu.memory_space<vmem>>, vector<1x8x128xi32>,
    %354 = arith.index_cast %c4_i32_50 : i32 to index
    %c0_66 = arith.constant 0 : index
    %c0_67 = arith.constant 0 : index
    %355 = vector.load %arg1[%354, %c0_66, %c0_67] : memref<8x8x128xf32, #tpu.memory_space<vmem>>, vector<1x8x128xf32>
    %356 = vector.shape_cast %355 : vector<1x8x128xf32> to vector<8x128xf32>
    %357 = arith.addf %356, %338 : vector<8x128xf32>
    %c5_i32_68 = arith.constant 5 : i32
    %358 = vector.extract_strided_slice %3 {offsets = [0, 0, 0], sizes = [1, 8, 128], strides = [1, 1, 1]} : vector<8x8x128xf32> to vector<1x8x128xf32>
    %359 = vector.shape_cast %358 : vector<1x8x128xf32> to vector<8x128xf32>
    %360 = vector.extract_strided_slice %357 {offsets = [0, 0], sizes = [1, 128], strides = [1, 1]} : vector<8x128xf32> to vector<1x128xf32>
    %361 = vector.broadcast %360 : vector<1x128xf32> to vector<8x128xf32>
    %362 = arith.addf %359, %361 : vector<8x128xf32>
    %363 = vector.extract_strided_slice %3 {offsets = [1, 0, 0], sizes = [1, 8, 128], strides = [1, 1, 1]} : vector<8x8x128xf32> to vector<1x8x128xf32>
    %364 = vector.shape_cast %363 : vector<1x8x128xf32> to vector<8x128xf32>
    %365 = vector.extract_strided_slice %357 {offsets = [1, 0], sizes = [1, 128], strides = [1, 1]} : vector<8x128xf32> to vector<1x128xf32>
    %366 = vector.broadcast %365 : vector<1x128xf32> to vector<8x128xf32>
    %367 = arith.addf %364, %366 : vector<8x128xf32>
    %368 = vector.extract_strided_slice %3 {offsets = [2, 0, 0], sizes = [1, 8, 128], strides = [1, 1, 1]} : vector<8x8x128xf32> to vector<1x8x128xf32>
    %369 = vector.shape_cast %368 : vector<1x8x128xf32> to vector<8x128xf32>
    %370 = vector.extract_strided_slice %357 {offsets = [2, 0], sizes = [1, 128], strides = [1, 1]} : vector<8x128xf32> to vector<1x128xf32>
    %371 = vector.broadcast %370 : vector<1x128xf32> to vector<8x128xf32>
    %372 = arith.addf %369, %371 : vector<8x128xf32>
    %373 = vector.extract_strided_slice %3 {offsets = [3, 0, 0], sizes = [1, 8, 128], strides = [1, 1, 1]} : vector<8x8x128xf32> to vector<1x8x128xf32>
    %374 = vector.shape_cast %373 : vector<1x8x128xf32> to vector<8x128xf32>
    %375 = vector.extract_strided_slice %357 {offsets = [3, 0], sizes = [1, 128], strides = [1, 1]} : vector<8x128xf32> to vector<1x128xf32>
    %376 = vector.broadcast %375 : vector<1x128xf32> to vector<8x128xf32>
    %377 = arith.addf %374, %376 : vector<8x128xf32>
    %378 = vector.extract_strided_slice %3 {offsets = [4, 0, 0], sizes = [1, 8, 128], strides = [1, 1, 1]} : vector<8x8x128xf32> to vector<1x8x128xf32>
    %379 = vector.shape_cast %378 : vector<1x8x128xf32> to vector<8x128xf32>
    %380 = vector.extract_strided_slice %357 {offsets = [4, 0], sizes = [1, 128], strides = [1, 1]} : vector<8x128xf32> to vector<1x128xf32>
    %381 = vector.broadcast %380 : vector<1x128xf32> to vector<8x128xf32>
    %382 = arith.addf %379, %381 : vector<8x128xf32>
    %383 = vector.extract_strided_slice %3 {offsets = [5, 0, 0], sizes = [1, 8, 128], strides = [1, 1, 1]} : vector<8x8x128xf32> to vector<1x8x128xf32>
    %384 = vector.shape_cast %383 : vector<1x8x128xf32> to vector<8x128xf32>
    %385 = vector.extract_strided_slice %357 {offsets = [5, 0], sizes = [1, 128], strides = [1, 1]} : vector<8x128xf32> to vector<1x128xf32>
    %386 = vector.broadcast %385 : vector<1x128xf32> to vector<8x128xf32>
    %387 = arith.addf %384, %386 : vector<8x128xf32>
    %388 = vector.extract_strided_slice %3 {offsets = [6, 0, 0], sizes = [1, 8, 128], strides = [1, 1, 1]} : vector<8x8x128xf32> to vector<1x8x128xf32>
    %389 = vector.shape_cast %388 : vector<1x8x128xf32> to vector<8x128xf32>
    %390 = vector.extract_strided_slice %357 {offsets = [6, 0], sizes = [1, 128], strides = [1, 1]} : vector<8x128xf32> to vector<1x128xf32>
    %391 = vector.broadcast %390 : vector<1x128xf32> to vector<8x128xf32>
    %392 = arith.addf %389, %391 : vector<8x128xf32>
    %393 = vector.extract_strided_slice %3 {offsets = [7, 0, 0], sizes = [1, 8, 128], strides = [1, 1, 1]} : vector<8x8x128xf32> to vector<1x8x128xf32>
    %394 = vector.shape_cast %393 : vector<1x8x128xf32> to vector<8x128xf32>
    %395 = vector.extract_strided_slice %357 {offsets = [7, 0], sizes = [1, 128], strides = [1, 1]} : vector<8x128xf32> to vector<1x128xf32>
    %396 = vector.broadcast %395 : vector<1x128xf32> to vector<8x128xf32>
    %397 = arith.addf %394, %396 : vector<8x128xf32>
    %398 = arith.cmpf ogt, %367, %362 : vector<8x128xf32>
    %399 = arith.select %398, %367, %362 : vector<8x128xi1>, vector<8x128xf32>
    %c1_i32_69 = arith.constant 1 : i32
    %c0_i32_70 = arith.constant 0 : i32
    %400 = vector.broadcast %c1_i32_69 : i32 to vector<8x128xi32>
    %401 = vector.broadcast %c0_i32_70 : i32 to vector<8x128xi32>
    %402 = arith.select %398, %400, %401 : vector<8x128xi1>, vector<8x128xi32>
    %403 = arith.cmpf ogt, %377, %372 : vector<8x128xf32>
    %404 = arith.select %403, %377, %372 : vector<8x128xi1>, vector<8x128xf32>
    %c3_i32_71 = arith.constant 3 : i32
    %c2_i32_72 = arith.constant 2 : i32
    %405 = vector.broadcast %c3_i32_71 : i32 to vector<8x128xi32>
    %406 = vector.broadcast %c2_i32_72 : i32 to vector<8x128xi32>
    %407 = arith.select %403, %405, %406 : vector<8x128xi1>, vector<8x128xi32>
    %408 = arith.cmpf ogt, %387, %382 : vector<8x128xf32>
    %409 = arith.select %408, %387, %382 : vector<8x128xi1>, vector<8x128xf32>
    %c5_i32_73 = arith.constant 5 : i32
    %c4_i32_74 = arith.constant 4 : i32
    %410 = vector.broadcast %c5_i32_73 : i32 to vector<8x128xi32>
    %411 = vector.broadcast %c4_i32_74 : i32 to vector<8x128xi32>
    %412 = arith.select %408, %410, %411 : vector<8x128xi1>, vector<8x128xi32>
    %413 = arith.cmpf ogt, %397, %392 : vector<8x128xf32>
    %414 = arith.select %413, %397, %392 : vector<8x128xi1>, vector<8x128xf32>
    %c7_i32_75 = arith.constant 7 : i32
    %c6_i32_76 = arith.constant 6 : i32
    %415 = vector.broadcast %c7_i32_75 : i32 to vector<8x128xi32>
    %416 = vector.broadcast %c6_i32_76 : i32 to vector<8x128xi32>
    %417 = arith.select %413, %415, %416 : vector<8x128xi1>, vector<8x128xi32>
    %418 = arith.cmpf ogt, %404, %399 : vector<8x128xf32>
    %419 = arith.select %418, %404, %399 : vector<8x128xi1>, vector<8x128xf32>
    %420 = arith.select %418, %407, %402 : vector<8x128xi1>, vector<8x128xi32>
    %421 = arith.cmpf ogt, %414, %409 : vector<8x128xf32>
    %422 = arith.select %421, %414, %409 : vector<8x128xi1>, vector<8x128xf32>
    %423 = arith.select %421, %417, %412 : vector<8x128xi1>, vector<8x128xi32>
    %424 = arith.cmpf ogt, %422, %419 : vector<8x128xf32>
    %425 = arith.select %424, %422, %419 : vector<8x128xi1>, vector<8x128xf32>
    %426 = arith.select %424, %423, %420 : vector<8x128xi1>, vector<8x128xi32>
    %427 = arith.index_cast %c5_i32_68 : i32 to index
    %c0_77 = arith.constant 0 : index
    %c0_78 = arith.constant 0 : index
    %428 = vector.load %arg3[%427, %c0_77, %c0_78] : memref<8x1x128xi32, #tpu.memory_space<vmem>>, vector<1x1x128xi32>
    %429 = vector.shape_cast %428 : vector<1x1x128xi32> to vector<1x128xi32>
    %c0_i32_79 = arith.constant 0 : i32
    %430 = vector.broadcast %c0_i32_79 : i32 to vector<1x128xi32>
    %431 = arith.cmpi ne, %429, %430 : vector<1x128xi32>
    %c0_i32_80 = arith.constant 0 : i32
    %432 = vector.shape_cast %431 : vector<1x128xi1> to vector<1x128xi1>
    %433 = vector.broadcast %432 : vector<1x128xi1> to vector<8x128xi1>
    %434 = vector.broadcast %c0_i32_80 : i32 to vector<8x128xi32>
    %435 = arith.select %433, %426, %434 : vector<8x128xi1>, vector<8x128xi32>
    %c1_i32_81 = arith.constant 1 : i32
    %436 = arith.subi %c5_i32_68, %c1_i32_81 : i32
    %437 = arith.index_cast %436 : i32 to index
    %c0_82 = arith.constant 0 : index
    %c0_83 = arith.constant 0 : index
    %438 = vector.load %arg5[%437, %c0_82, %c0_83] : memref<7x8x128xi32, #tpu.memory_space<vmem>>, vector<1x8x128xi32>
    %439 = vector.shape_cast %438 : vector<1x8x128xi32> to vector<8x128xi32>
    %440 = vector.shape_cast %435 : vector<8x128xi32> to vector<1x8x128xi32>
    tpu.vector_store %arg5[%437, %c0_82, %c0_83], %440 {strides = array<i32>} : memref<7x8x128xi32, #tpu.memory_space<vmem>>, vector<1x8x128xi32>,
    %441 = arith.index_cast %c5_i32_68 : i32 to index
    %c0_84 = arith.constant 0 : index
    %c0_85 = arith.constant 0 : index
    %442 = vector.load %arg1[%441, %c0_84, %c0_85] : memref<8x8x128xf32, #tpu.memory_space<vmem>>, vector<1x8x128xf32>
    %443 = vector.shape_cast %442 : vector<1x8x128xf32> to vector<8x128xf32>
    %444 = arith.addf %443, %425 : vector<8x128xf32>
    %c6_i32_86 = arith.constant 6 : i32
    %445 = vector.extract_strided_slice %3 {offsets = [0, 0, 0], sizes = [1, 8, 128], strides = [1, 1, 1]} : vector<8x8x128xf32> to vector<1x8x128xf32>
    %446 = vector.shape_cast %445 : vector<1x8x128xf32> to vector<8x128xf32>
    %447 = vector.extract_strided_slice %444 {offsets = [0, 0], sizes = [1, 128], strides = [1, 1]} : vector<8x128xf32> to vector<1x128xf32>
    %448 = vector.broadcast %447 : vector<1x128xf32> to vector<8x128xf32>
    %449 = arith.addf %446, %448 : vector<8x128xf32>
    %450 = vector.extract_strided_slice %3 {offsets = [1, 0, 0], sizes = [1, 8, 128], strides = [1, 1, 1]} : vector<8x8x128xf32> to vector<1x8x128xf32>
    %451 = vector.shape_cast %450 : vector<1x8x128xf32> to vector<8x128xf32>
    %452 = vector.extract_strided_slice %444 {offsets = [1, 0], sizes = [1, 128], strides = [1, 1]} : vector<8x128xf32> to vector<1x128xf32>
    %453 = vector.broadcast %452 : vector<1x128xf32> to vector<8x128xf32>
    %454 = arith.addf %451, %453 : vector<8x128xf32>
    %455 = vector.extract_strided_slice %3 {offsets = [2, 0, 0], sizes = [1, 8, 128], strides = [1, 1, 1]} : vector<8x8x128xf32> to vector<1x8x128xf32>
    %456 = vector.shape_cast %455 : vector<1x8x128xf32> to vector<8x128xf32>
    %457 = vector.extract_strided_slice %444 {offsets = [2, 0], sizes = [1, 128], strides = [1, 1]} : vector<8x128xf32> to vector<1x128xf32>
    %458 = vector.broadcast %457 : vector<1x128xf32> to vector<8x128xf32>
    %459 = arith.addf %456, %458 : vector<8x128xf32>
    %460 = vector.extract_strided_slice %3 {offsets = [3, 0, 0], sizes = [1, 8, 128], strides = [1, 1, 1]} : vector<8x8x128xf32> to vector<1x8x128xf32>
    %461 = vector.shape_cast %460 : vector<1x8x128xf32> to vector<8x128xf32>
    %462 = vector.extract_strided_slice %444 {offsets = [3, 0], sizes = [1, 128], strides = [1, 1]} : vector<8x128xf32> to vector<1x128xf32>
    %463 = vector.broadcast %462 : vector<1x128xf32> to vector<8x128xf32>
    %464 = arith.addf %461, %463 : vector<8x128xf32>
    %465 = vector.extract_strided_slice %3 {offsets = [4, 0, 0], sizes = [1, 8, 128], strides = [1, 1, 1]} : vector<8x8x128xf32> to vector<1x8x128xf32>
    %466 = vector.shape_cast %465 : vector<1x8x128xf32> to vector<8x128xf32>
    %467 = vector.extract_strided_slice %444 {offsets = [4, 0], sizes = [1, 128], strides = [1, 1]} : vector<8x128xf32> to vector<1x128xf32>
    %468 = vector.broadcast %467 : vector<1x128xf32> to vector<8x128xf32>
    %469 = arith.addf %466, %468 : vector<8x128xf32>
    %470 = vector.extract_strided_slice %3 {offsets = [5, 0, 0], sizes = [1, 8, 128], strides = [1, 1, 1]} : vector<8x8x128xf32> to vector<1x8x128xf32>
    %471 = vector.shape_cast %470 : vector<1x8x128xf32> to vector<8x128xf32>
    %472 = vector.extract_strided_slice %444 {offsets = [5, 0], sizes = [1, 128], strides = [1, 1]} : vector<8x128xf32> to vector<1x128xf32>
    %473 = vector.broadcast %472 : vector<1x128xf32> to vector<8x128xf32>
    %474 = arith.addf %471, %473 : vector<8x128xf32>
    %475 = vector.extract_strided_slice %3 {offsets = [6, 0, 0], sizes = [1, 8, 128], strides = [1, 1, 1]} : vector<8x8x128xf32> to vector<1x8x128xf32>
    %476 = vector.shape_cast %475 : vector<1x8x128xf32> to vector<8x128xf32>
    %477 = vector.extract_strided_slice %444 {offsets = [6, 0], sizes = [1, 128], strides = [1, 1]} : vector<8x128xf32> to vector<1x128xf32>
    %478 = vector.broadcast %477 : vector<1x128xf32> to vector<8x128xf32>
    %479 = arith.addf %476, %478 : vector<8x128xf32>
    %480 = vector.extract_strided_slice %3 {offsets = [7, 0, 0], sizes = [1, 8, 128], strides = [1, 1, 1]} : vector<8x8x128xf32> to vector<1x8x128xf32>
    %481 = vector.shape_cast %480 : vector<1x8x128xf32> to vector<8x128xf32>
    %482 = vector.extract_strided_slice %444 {offsets = [7, 0], sizes = [1, 128], strides = [1, 1]} : vector<8x128xf32> to vector<1x128xf32>
    %483 = vector.broadcast %482 : vector<1x128xf32> to vector<8x128xf32>
    %484 = arith.addf %481, %483 : vector<8x128xf32>
    %485 = arith.cmpf ogt, %454, %449 : vector<8x128xf32>
    %486 = arith.select %485, %454, %449 : vector<8x128xi1>, vector<8x128xf32>
    %c1_i32_87 = arith.constant 1 : i32
    %c0_i32_88 = arith.constant 0 : i32
    %487 = vector.broadcast %c1_i32_87 : i32 to vector<8x128xi32>
    %488 = vector.broadcast %c0_i32_88 : i32 to vector<8x128xi32>
    %489 = arith.select %485, %487, %488 : vector<8x128xi1>, vector<8x128xi32>
    %490 = arith.cmpf ogt, %464, %459 : vector<8x128xf32>
    %491 = arith.select %490, %464, %459 : vector<8x128xi1>, vector<8x128xf32>
    %c3_i32_89 = arith.constant 3 : i32
    %c2_i32_90 = arith.constant 2 : i32
    %492 = vector.broadcast %c3_i32_89 : i32 to vector<8x128xi32>
    %493 = vector.broadcast %c2_i32_90 : i32 to vector<8x128xi32>
    %494 = arith.select %490, %492, %493 : vector<8x128xi1>, vector<8x128xi32>
    %495 = arith.cmpf ogt, %474, %469 : vector<8x128xf32>
    %496 = arith.select %495, %474, %469 : vector<8x128xi1>, vector<8x128xf32>
    %c5_i32_91 = arith.constant 5 : i32
    %c4_i32_92 = arith.constant 4 : i32
    %497 = vector.broadcast %c5_i32_91 : i32 to vector<8x128xi32>
    %498 = vector.broadcast %c4_i32_92 : i32 to vector<8x128xi32>
    %499 = arith.select %495, %497, %498 : vector<8x128xi1>, vector<8x128xi32>
    %500 = arith.cmpf ogt, %484, %479 : vector<8x128xf32>
    %501 = arith.select %500, %484, %479 : vector<8x128xi1>, vector<8x128xf32>
    %c7_i32_93 = arith.constant 7 : i32
    %c6_i32_94 = arith.constant 6 : i32
    %502 = vector.broadcast %c7_i32_93 : i32 to vector<8x128xi32>
    %503 = vector.broadcast %c6_i32_94 : i32 to vector<8x128xi32>
    %504 = arith.select %500, %502, %503 : vector<8x128xi1>, vector<8x128xi32>
    %505 = arith.cmpf ogt, %491, %486 : vector<8x128xf32>
    %506 = arith.select %505, %491, %486 : vector<8x128xi1>, vector<8x128xf32>
    %507 = arith.select %505, %494, %489 : vector<8x128xi1>, vector<8x128xi32>
    %508 = arith.cmpf ogt, %501, %496 : vector<8x128xf32>
    %509 = arith.select %508, %501, %496 : vector<8x128xi1>, vector<8x128xf32>
    %510 = arith.select %508, %504, %499 : vector<8x128xi1>, vector<8x128xi32>
    %511 = arith.cmpf ogt, %509, %506 : vector<8x128xf32>
    %512 = arith.select %511, %509, %506 : vector<8x128xi1>, vector<8x128xf32>
    %513 = arith.select %511, %510, %507 : vector<8x128xi1>, vector<8x128xi32>
    %514 = arith.index_cast %c6_i32_86 : i32 to index
    %c0_95 = arith.constant 0 : index
    %c0_96 = arith.constant 0 : index
    %515 = vector.load %arg3[%514, %c0_95, %c0_96] : memref<8x1x128xi32, #tpu.memory_space<vmem>>, vector<1x1x128xi32>
    %516 = vector.shape_cast %515 : vector<1x1x128xi32> to vector<1x128xi32>
    %c0_i32_97 = arith.constant 0 : i32
    %517 = vector.broadcast %c0_i32_97 : i32 to vector<1x128xi32>
    %518 = arith.cmpi ne, %516, %517 : vector<1x128xi32>
    %c0_i32_98 = arith.constant 0 : i32
    %519 = vector.shape_cast %518 : vector<1x128xi1> to vector<1x128xi1>
    %520 = vector.broadcast %519 : vector<1x128xi1> to vector<8x128xi1>
    %521 = vector.broadcast %c0_i32_98 : i32 to vector<8x128xi32>
    %522 = arith.select %520, %513, %521 : vector<8x128xi1>, vector<8x128xi32>
    %c1_i32_99 = arith.constant 1 : i32
    %523 = arith.subi %c6_i32_86, %c1_i32_99 : i32
    %524 = arith.index_cast %523 : i32 to index
    %c0_100 = arith.constant 0 : index
    %c0_101 = arith.constant 0 : index
    %525 = vector.load %arg5[%524, %c0_100, %c0_101] : memref<7x8x128xi32, #tpu.memory_space<vmem>>, vector<1x8x128xi32>
    %526 = vector.shape_cast %525 : vector<1x8x128xi32> to vector<8x128xi32>
    %527 = vector.shape_cast %522 : vector<8x128xi32> to vector<1x8x128xi32>
    tpu.vector_store %arg5[%524, %c0_100, %c0_101], %527 {strides = array<i32>} : memref<7x8x128xi32, #tpu.memory_space<vmem>>, vector<1x8x128xi32>,
    %528 = arith.index_cast %c6_i32_86 : i32 to index
    %c0_102 = arith.constant 0 : index
    %c0_103 = arith.constant 0 : index
    %529 = vector.load %arg1[%528, %c0_102, %c0_103] : memref<8x8x128xf32, #tpu.memory_space<vmem>>, vector<1x8x128xf32>
    %530 = vector.shape_cast %529 : vector<1x8x128xf32> to vector<8x128xf32>
    %531 = arith.addf %530, %512 : vector<8x128xf32>
    %c7_i32_104 = arith.constant 7 : i32
    %532 = vector.extract_strided_slice %3 {offsets = [0, 0, 0], sizes = [1, 8, 128], strides = [1, 1, 1]} : vector<8x8x128xf32> to vector<1x8x128xf32>
    %533 = vector.shape_cast %532 : vector<1x8x128xf32> to vector<8x128xf32>
    %534 = vector.extract_strided_slice %531 {offsets = [0, 0], sizes = [1, 128], strides = [1, 1]} : vector<8x128xf32> to vector<1x128xf32>
    %535 = vector.broadcast %534 : vector<1x128xf32> to vector<8x128xf32>
    %536 = arith.addf %533, %535 : vector<8x128xf32>
    %537 = vector.extract_strided_slice %3 {offsets = [1, 0, 0], sizes = [1, 8, 128], strides = [1, 1, 1]} : vector<8x8x128xf32> to vector<1x8x128xf32>
    %538 = vector.shape_cast %537 : vector<1x8x128xf32> to vector<8x128xf32>
    %539 = vector.extract_strided_slice %531 {offsets = [1, 0], sizes = [1, 128], strides = [1, 1]} : vector<8x128xf32> to vector<1x128xf32>
    %540 = vector.broadcast %539 : vector<1x128xf32> to vector<8x128xf32>
    %541 = arith.addf %538, %540 : vector<8x128xf32>
    %542 = vector.extract_strided_slice %3 {offsets = [2, 0, 0], sizes = [1, 8, 128], strides = [1, 1, 1]} : vector<8x8x128xf32> to vector<1x8x128xf32>
    %543 = vector.shape_cast %542 : vector<1x8x128xf32> to vector<8x128xf32>
    %544 = vector.extract_strided_slice %531 {offsets = [2, 0], sizes = [1, 128], strides = [1, 1]} : vector<8x128xf32> to vector<1x128xf32>
    %545 = vector.broadcast %544 : vector<1x128xf32> to vector<8x128xf32>
    %546 = arith.addf %543, %545 : vector<8x128xf32>
    %547 = vector.extract_strided_slice %3 {offsets = [3, 0, 0], sizes = [1, 8, 128], strides = [1, 1, 1]} : vector<8x8x128xf32> to vector<1x8x128xf32>
    %548 = vector.shape_cast %547 : vector<1x8x128xf32> to vector<8x128xf32>
    %549 = vector.extract_strided_slice %531 {offsets = [3, 0], sizes = [1, 128], strides = [1, 1]} : vector<8x128xf32> to vector<1x128xf32>
    %550 = vector.broadcast %549 : vector<1x128xf32> to vector<8x128xf32>
    %551 = arith.addf %548, %550 : vector<8x128xf32>
    %552 = vector.extract_strided_slice %3 {offsets = [4, 0, 0], sizes = [1, 8, 128], strides = [1, 1, 1]} : vector<8x8x128xf32> to vector<1x8x128xf32>
    %553 = vector.shape_cast %552 : vector<1x8x128xf32> to vector<8x128xf32>
    %554 = vector.extract_strided_slice %531 {offsets = [4, 0], sizes = [1, 128], strides = [1, 1]} : vector<8x128xf32> to vector<1x128xf32>
    %555 = vector.broadcast %554 : vector<1x128xf32> to vector<8x128xf32>
    %556 = arith.addf %553, %555 : vector<8x128xf32>
    %557 = vector.extract_strided_slice %3 {offsets = [5, 0, 0], sizes = [1, 8, 128], strides = [1, 1, 1]} : vector<8x8x128xf32> to vector<1x8x128xf32>
    %558 = vector.shape_cast %557 : vector<1x8x128xf32> to vector<8x128xf32>
    %559 = vector.extract_strided_slice %531 {offsets = [5, 0], sizes = [1, 128], strides = [1, 1]} : vector<8x128xf32> to vector<1x128xf32>
    %560 = vector.broadcast %559 : vector<1x128xf32> to vector<8x128xf32>
    %561 = arith.addf %558, %560 : vector<8x128xf32>
    %562 = vector.extract_strided_slice %3 {offsets = [6, 0, 0], sizes = [1, 8, 128], strides = [1, 1, 1]} : vector<8x8x128xf32> to vector<1x8x128xf32>
    %563 = vector.shape_cast %562 : vector<1x8x128xf32> to vector<8x128xf32>
    %564 = vector.extract_strided_slice %531 {offsets = [6, 0], sizes = [1, 128], strides = [1, 1]} : vector<8x128xf32> to vector<1x128xf32>
    %565 = vector.broadcast %564 : vector<1x128xf32> to vector<8x128xf32>
    %566 = arith.addf %563, %565 : vector<8x128xf32>
    %567 = vector.extract_strided_slice %3 {offsets = [7, 0, 0], sizes = [1, 8, 128], strides = [1, 1, 1]} : vector<8x8x128xf32> to vector<1x8x128xf32>
    %568 = vector.shape_cast %567 : vector<1x8x128xf32> to vector<8x128xf32>
    %569 = vector.extract_strided_slice %531 {offsets = [7, 0], sizes = [1, 128], strides = [1, 1]} : vector<8x128xf32> to vector<1x128xf32>
    %570 = vector.broadcast %569 : vector<1x128xf32> to vector<8x128xf32>
    %571 = arith.addf %568, %570 : vector<8x128xf32>
    %572 = arith.cmpf ogt, %541, %536 : vector<8x128xf32>
    %573 = arith.select %572, %541, %536 : vector<8x128xi1>, vector<8x128xf32>
    %c1_i32_105 = arith.constant 1 : i32
    %c0_i32_106 = arith.constant 0 : i32
    %574 = vector.broadcast %c1_i32_105 : i32 to vector<8x128xi32>
    %575 = vector.broadcast %c0_i32_106 : i32 to vector<8x128xi32>
    %576 = arith.select %572, %574, %575 : vector<8x128xi1>, vector<8x128xi32>
    %577 = arith.cmpf ogt, %551, %546 : vector<8x128xf32>
    %578 = arith.select %577, %551, %546 : vector<8x128xi1>, vector<8x128xf32>
    %c3_i32_107 = arith.constant 3 : i32
    %c2_i32_108 = arith.constant 2 : i32
    %579 = vector.broadcast %c3_i32_107 : i32 to vector<8x128xi32>
    %580 = vector.broadcast %c2_i32_108 : i32 to vector<8x128xi32>
    %581 = arith.select %577, %579, %580 : vector<8x128xi1>, vector<8x128xi32>
    %582 = arith.cmpf ogt, %561, %556 : vector<8x128xf32>
    %583 = arith.select %582, %561, %556 : vector<8x128xi1>, vector<8x128xf32>
    %c5_i32_109 = arith.constant 5 : i32
    %c4_i32_110 = arith.constant 4 : i32
    %584 = vector.broadcast %c5_i32_109 : i32 to vector<8x128xi32>
    %585 = vector.broadcast %c4_i32_110 : i32 to vector<8x128xi32>
    %586 = arith.select %582, %584, %585 : vector<8x128xi1>, vector<8x128xi32>
    %587 = arith.cmpf ogt, %571, %566 : vector<8x128xf32>
    %588 = arith.select %587, %571, %566 : vector<8x128xi1>, vector<8x128xf32>
    %c7_i32_111 = arith.constant 7 : i32
    %c6_i32_112 = arith.constant 6 : i32
    %589 = vector.broadcast %c7_i32_111 : i32 to vector<8x128xi32>
    %590 = vector.broadcast %c6_i32_112 : i32 to vector<8x128xi32>
    %591 = arith.select %587, %589, %590 : vector<8x128xi1>, vector<8x128xi32>
    %592 = arith.cmpf ogt, %578, %573 : vector<8x128xf32>
    %593 = arith.select %592, %578, %573 : vector<8x128xi1>, vector<8x128xf32>
    %594 = arith.select %592, %581, %576 : vector<8x128xi1>, vector<8x128xi32>
    %595 = arith.cmpf ogt, %588, %583 : vector<8x128xf32>
    %596 = arith.select %595, %588, %583 : vector<8x128xi1>, vector<8x128xf32>
    %597 = arith.select %595, %591, %586 : vector<8x128xi1>, vector<8x128xi32>
    %598 = arith.cmpf ogt, %596, %593 : vector<8x128xf32>
    %599 = arith.select %598, %596, %593 : vector<8x128xi1>, vector<8x128xf32>
    %600 = arith.select %598, %597, %594 : vector<8x128xi1>, vector<8x128xi32>
    %601 = arith.index_cast %c7_i32_104 : i32 to index
    %c0_113 = arith.constant 0 : index
    %c0_114 = arith.constant 0 : index
    %602 = vector.load %arg3[%601, %c0_113, %c0_114] : memref<8x1x128xi32, #tpu.memory_space<vmem>>, vector<1x1x128xi32>
    %603 = vector.shape_cast %602 : vector<1x1x128xi32> to vector<1x128xi32>
    %c0_i32_115 = arith.constant 0 : i32
    %604 = vector.broadcast %c0_i32_115 : i32 to vector<1x128xi32>
    %605 = arith.cmpi ne, %603, %604 : vector<1x128xi32>
    %c0_i32_116 = arith.constant 0 : i32
    %606 = vector.shape_cast %605 : vector<1x128xi1> to vector<1x128xi1>
    %607 = vector.broadcast %606 : vector<1x128xi1> to vector<8x128xi1>
    %608 = vector.broadcast %c0_i32_116 : i32 to vector<8x128xi32>
    %609 = arith.select %607, %600, %608 : vector<8x128xi1>, vector<8x128xi32>
    %c1_i32_117 = arith.constant 1 : i32
    %610 = arith.subi %c7_i32_104, %c1_i32_117 : i32
    %611 = arith.index_cast %610 : i32 to index
    %c0_118 = arith.constant 0 : index
    %c0_119 = arith.constant 0 : index
    %612 = vector.load %arg5[%611, %c0_118, %c0_119] : memref<7x8x128xi32, #tpu.memory_space<vmem>>, vector<1x8x128xi32>
    %613 = vector.shape_cast %612 : vector<1x8x128xi32> to vector<8x128xi32>
    %614 = vector.shape_cast %609 : vector<8x128xi32> to vector<1x8x128xi32>
    tpu.vector_store %arg5[%611, %c0_118, %c0_119], %614 {strides = array<i32>} : memref<7x8x128xi32, #tpu.memory_space<vmem>>, vector<1x8x128xi32>,
    %615 = arith.index_cast %c7_i32_104 : i32 to index
    %c0_120 = arith.constant 0 : index
    %c0_121 = arith.constant 0 : index
    %616 = vector.load %arg1[%615, %c0_120, %c0_121] : memref<8x8x128xf32, #tpu.memory_space<vmem>>, vector<1x8x128xf32>
    %617 = vector.shape_cast %616 : vector<1x8x128xf32> to vector<8x128xf32>
    %618 = arith.addf %617, %599 : vector<8x128xf32>
    %c7_i32_122 = arith.constant 7 : i32
    %c0_i32_123 = arith.constant 0 : i32
    %619 = vector.broadcast %c0_i32_123 : i32 to vector<1x128xi32>
    %c6 = arith.constant 6 : index
    %c7 = arith.constant 7 : index
    %c0_124 = arith.constant 0 : index
    %620 = vector.load %arg5[%c6, %c7, %c0_124] : memref<7x8x128xi32, #tpu.memory_space<vmem>>, vector<1x1x128xi32>
    %621 = vector.shape_cast %620 : vector<1x1x128xi32> to vector<1x128xi32>
    %c0_125 = arith.constant 0 : index
    %c7_126 = arith.constant 7 : index
    %c0_127 = arith.constant 0 : index
    %622 = vector.load %arg4[%c0_125, %c7_126, %c0_127] : memref<1x8x128xi32, #tpu.memory_space<vmem>>, vector<1x1x128xi32>
    %623 = vector.shape_cast %622 : vector<1x1x128xi32> to vector<1x128xi32>
    %624 = vector.shape_cast %621 : vector<1x128xi32> to vector<1x1x128xi32>
    tpu.vector_store %arg4[%c0_125, %c7_126, %c0_127], %624 {strides = array<i32>} : memref<1x8x128xi32, #tpu.memory_space<vmem>>, vector<1x1x128xi32>,
    %c5 = arith.constant 5 : index
    %c0_128 = arith.constant 0 : index
    %c0_129 = arith.constant 0 : index
    %625 = vector.load %arg5[%c5, %c0_128, %c0_129] : memref<7x8x128xi32, #tpu.memory_space<vmem>>, vector<1x8x128xi32>
    %626 = vector.shape_cast %625 : vector<1x8x128xi32> to vector<8x128xi32>
    %627 = vector.broadcast %621 : vector<1x128xi32> to vector<8x128xi32>
    %628 = arith.cmpi eq, %4, %627 : vector<8x128xi32>
    %629 = arith.extui %628 : vector<8x128xi1> to vector<8x128xi32>
    %630 = arith.muli %626, %629 : vector<8x128xi32>
    %cst = arith.constant dense<0> : vector<128xi32>
    %631 = vector.multi_reduction <add>, %630, %cst [0] : vector<8x128xi32> to vector<128xi32>
    %632 = vector.shape_cast %631 : vector<128xi32> to vector<1x128xi32>
    %c0_130 = arith.constant 0 : index
    %c6_131 = arith.constant 6 : index
    %c0_132 = arith.constant 0 : index
    %633 = vector.load %arg4[%c0_130, %c6_131, %c0_132] : memref<1x8x128xi32, #tpu.memory_space<vmem>>, vector<1x1x128xi32>
    %634 = vector.shape_cast %633 : vector<1x1x128xi32> to vector<1x128xi32>
    %635 = vector.shape_cast %632 : vector<1x128xi32> to vector<1x1x128xi32>
    tpu.vector_store %arg4[%c0_130, %c6_131, %c0_132], %635 {strides = array<i32>} : memref<1x8x128xi32, #tpu.memory_space<vmem>>, vector<1x1x128xi32>,
    %c4 = arith.constant 4 : index
    %c0_133 = arith.constant 0 : index
    %c0_134 = arith.constant 0 : index
    %636 = vector.load %arg5[%c4, %c0_133, %c0_134] : memref<7x8x128xi32, #tpu.memory_space<vmem>>, vector<1x8x128xi32>
    %637 = vector.shape_cast %636 : vector<1x8x128xi32> to vector<8x128xi32>
    %638 = vector.broadcast %632 : vector<1x128xi32> to vector<8x128xi32>
    %639 = arith.cmpi eq, %4, %638 : vector<8x128xi32>
    %640 = arith.extui %639 : vector<8x128xi1> to vector<8x128xi32>
    %641 = arith.muli %637, %640 : vector<8x128xi32>
    %cst_135 = arith.constant dense<0> : vector<128xi32>
    %642 = vector.multi_reduction <add>, %641, %cst_135 [0] : vector<8x128xi32> to vector<128xi32>
    %643 = vector.shape_cast %642 : vector<128xi32> to vector<1x128xi32>
    %c0_136 = arith.constant 0 : index
    %c5_137 = arith.constant 5 : index
    %c0_138 = arith.constant 0 : index
    %644 = vector.load %arg4[%c0_136, %c5_137, %c0_138] : memref<1x8x128xi32, #tpu.memory_space<vmem>>, vector<1x1x128xi32>
    %645 = vector.shape_cast %644 : vector<1x1x128xi32> to vector<1x128xi32>
    %646 = vector.shape_cast %643 : vector<1x128xi32> to vector<1x1x128xi32>
    tpu.vector_store %arg4[%c0_136, %c5_137, %c0_138], %646 {strides = array<i32>} : memref<1x8x128xi32, #tpu.memory_space<vmem>>, vector<1x1x128xi32>,
    %c3 = arith.constant 3 : index
    %c0_139 = arith.constant 0 : index
    %c0_140 = arith.constant 0 : index
    %647 = vector.load %arg5[%c3, %c0_139, %c0_140] : memref<7x8x128xi32, #tpu.memory_space<vmem>>, vector<1x8x128xi32>
    %648 = vector.shape_cast %647 : vector<1x8x128xi32> to vector<8x128xi32>
    %649 = vector.broadcast %643 : vector<1x128xi32> to vector<8x128xi32>
    %650 = arith.cmpi eq, %4, %649 : vector<8x128xi32>
    %651 = arith.extui %650 : vector<8x128xi1> to vector<8x128xi32>
    %652 = arith.muli %648, %651 : vector<8x128xi32>
    %cst_141 = arith.constant dense<0> : vector<128xi32>
    %653 = vector.multi_reduction <add>, %652, %cst_141 [0] : vector<8x128xi32> to vector<128xi32>
    %654 = vector.shape_cast %653 : vector<128xi32> to vector<1x128xi32>
    %c0_142 = arith.constant 0 : index
    %c4_143 = arith.constant 4 : index
    %c0_144 = arith.constant 0 : index
    %655 = vector.load %arg4[%c0_142, %c4_143, %c0_144] : memref<1x8x128xi32, #tpu.memory_space<vmem>>, vector<1x1x128xi32>
    %656 = vector.shape_cast %655 : vector<1x1x128xi32> to vector<1x128xi32>
    %657 = vector.shape_cast %654 : vector<1x128xi32> to vector<1x1x128xi32>
    tpu.vector_store %arg4[%c0_142, %c4_143, %c0_144], %657 {strides = array<i32>} : memref<1x8x128xi32, #tpu.memory_space<vmem>>, vector<1x1x128xi32>,
    %c2 = arith.constant 2 : index
    %c0_145 = arith.constant 0 : index
    %c0_146 = arith.constant 0 : index
    %658 = vector.load %arg5[%c2, %c0_145, %c0_146] : memref<7x8x128xi32, #tpu.memory_space<vmem>>, vector<1x8x128xi32>
    %659 = vector.shape_cast %658 : vector<1x8x128xi32> to vector<8x128xi32>
    %660 = vector.broadcast %654 : vector<1x128xi32> to vector<8x128xi32>
    %661 = arith.cmpi eq, %4, %660 : vector<8x128xi32>
    %662 = arith.extui %661 : vector<8x128xi1> to vector<8x128xi32>
    %663 = arith.muli %659, %662 : vector<8x128xi32>
    %cst_147 = arith.constant dense<0> : vector<128xi32>
    %664 = vector.multi_reduction <add>, %663, %cst_147 [0] : vector<8x128xi32> to vector<128xi32>
    %665 = vector.shape_cast %664 : vector<128xi32> to vector<1x128xi32>
    %c0_148 = arith.constant 0 : index
    %c3_149 = arith.constant 3 : index
    %c0_150 = arith.constant 0 : index
    %666 = vector.load %arg4[%c0_148, %c3_149, %c0_150] : memref<1x8x128xi32, #tpu.memory_space<vmem>>, vector<1x1x128xi32>
    %667 = vector.shape_cast %666 : vector<1x1x128xi32> to vector<1x128xi32>
    %668 = vector.shape_cast %665 : vector<1x128xi32> to vector<1x1x128xi32>
    tpu.vector_store %arg4[%c0_148, %c3_149, %c0_150], %668 {strides = array<i32>} : memref<1x8x128xi32, #tpu.memory_space<vmem>>, vector<1x1x128xi32>,
    %c1 = arith.constant 1 : index
    %c0_151 = arith.constant 0 : index
    %c0_152 = arith.constant 0 : index
    %669 = vector.load %arg5[%c1, %c0_151, %c0_152] : memref<7x8x128xi32, #tpu.memory_space<vmem>>, vector<1x8x128xi32>
    %670 = vector.shape_cast %669 : vector<1x8x128xi32> to vector<8x128xi32>
    %671 = vector.broadcast %665 : vector<1x128xi32> to vector<8x128xi32>
    %672 = arith.cmpi eq, %4, %671 : vector<8x128xi32>
    %673 = arith.extui %672 : vector<8x128xi1> to vector<8x128xi32>
    %674 = arith.muli %670, %673 : vector<8x128xi32>
    %cst_153 = arith.constant dense<0> : vector<128xi32>
    %675 = vector.multi_reduction <add>, %674, %cst_153 [0] : vector<8x128xi32> to vector<128xi32>
    %676 = vector.shape_cast %675 : vector<128xi32> to vector<1x128xi32>
    %c0_154 = arith.constant 0 : index
    %c2_155 = arith.constant 2 : index
    %c0_156 = arith.constant 0 : index
    %677 = vector.load %arg4[%c0_154, %c2_155, %c0_156] : memref<1x8x128xi32, #tpu.memory_space<vmem>>, vector<1x1x128xi32>
    %678 = vector.shape_cast %677 : vector<1x1x128xi32> to vector<1x128xi32>
    %679 = vector.shape_cast %676 : vector<1x128xi32> to vector<1x1x128xi32>
    tpu.vector_store %arg4[%c0_154, %c2_155, %c0_156], %679 {strides = array<i32>} : memref<1x8x128xi32, #tpu.memory_space<vmem>>, vector<1x1x128xi32>,
    %c0_157 = arith.constant 0 : index
    %c0_158 = arith.constant 0 : index
    %c0_159 = arith.constant 0 : index
    %680 = vector.load %arg5[%c0_157, %c0_158, %c0_159] : memref<7x8x128xi32, #tpu.memory_space<vmem>>, vector<1x8x128xi32>
    %681 = vector.shape_cast %680 : vector<1x8x128xi32> to vector<8x128xi32>
    %682 = vector.broadcast %676 : vector<1x128xi32> to vector<8x128xi32>
    %683 = arith.cmpi eq, %4, %682 : vector<8x128xi32>
    %684 = arith.extui %683 : vector<8x128xi1> to vector<8x128xi32>
    %685 = arith.muli %681, %684 : vector<8x128xi32>
    %cst_160 = arith.constant dense<0> : vector<128xi32>
    %686 = vector.multi_reduction <add>, %685, %cst_160 [0] : vector<8x128xi32> to vector<128xi32>
    %687 = vector.shape_cast %686 : vector<128xi32> to vector<1x128xi32>
    %c0_161 = arith.constant 0 : index
    %c1_162 = arith.constant 1 : index
    %c0_163 = arith.constant 0 : index
    %688 = vector.load %arg4[%c0_161, %c1_162, %c0_163] : memref<1x8x128xi32, #tpu.memory_space<vmem>>, vector<1x1x128xi32>
    %689 = vector.shape_cast %688 : vector<1x1x128xi32> to vector<1x128xi32>
    %690 = vector.shape_cast %687 : vector<1x128xi32> to vector<1x1x128xi32>
    tpu.vector_store %arg4[%c0_161, %c1_162, %c0_163], %690 {strides = array<i32>} : memref<1x8x128xi32, #tpu.memory_space<vmem>>, vector<1x1x128xi32>,
    %c0_164 = arith.constant 0 : index
    %c0_165 = arith.constant 0 : index
    %c0_166 = arith.constant 0 : index
    %691 = vector.load %arg4[%c0_164, %c0_165, %c0_166] : memref<1x8x128xi32, #tpu.memory_space<vmem>>, vector<1x1x128xi32>
    %692 = vector.shape_cast %691 : vector<1x1x128xi32> to vector<1x128xi32>
    %693 = vector.shape_cast %619 : vector<1x128xi32> to vector<1x1x128xi32>
    tpu.vector_store %arg4[%c0_164, %c0_165, %c0_166], %693 {strides = array<i32>} : memref<1x8x128xi32, #tpu.memory_space<vmem>>, vector<1x1x128xi32>,
    return
  }
  func.func @transform_0(%arg0: i32) -> (i32, i32, i32) {
    %c0_i32 = arith.constant 0 : i32
    %c0_i32_0 = arith.constant 0 : i32
    %c0_i32_1 = arith.constant 0 : i32
    return %c0_i32, %c0_i32_0, %arg0 : i32, i32, i32
  }
  func.func @transform_1(%arg0: i32) -> (i32, i32) {
    %c0_i32 = arith.constant 0 : i32
    %c0_i32_0 = arith.constant 0 : i32
    %c0_i32_1 = arith.constant 0 : i32
    return %c0_i32, %c0_i32_0 : i32, i32
  }
  func.func @transform_2(%arg0: i32) -> (i32, i32, i32) {
    %c0_i32 = arith.constant 0 : i32
    %c0_i32_0 = arith.constant 0 : i32
    %c0_i32_1 = arith.constant 0 : i32
    return %c0_i32, %c0_i32_0, %arg0 : i32, i32, i32
  }
  func.func @transform_3(%arg0: i32) -> (i32, i32, i32) {
    %c0_i32 = arith.constant 0 : i32
    %c0_i32_0 = arith.constant 0 : i32
    %c0_i32_1 = arith.constant 0 : i32
    return %c0_i32, %c0_i32_0, %arg0 : i32, i32, i32
  }
}

</mosaic_0001>

<bundles_post_ra>
// kernel: tpu_custom_call.1
= control target key start
LH: loop header
LB: loop body
LE: loop exit
PB: predicated region body
PF: predicated region fallthrough
CT: control target
= control target key end

     0   :  { %8 = vsyncpa [#allocation4], 0  ;;  %s1167_s0 = inlined_call_operand.hbm [shape: f32[8,8,128], index: 0, kind: input, shape index: {}]   ;;  %s1168_s1 = inlined_call_operand.hbm [shape: f32[8,8], index: 1, kind: input, shape index: {}]   ;;  %s1169_s2 = inlined_call_operand.hbm [shape: s32[8,1,128], index: 2, kind: input, shape index: {}]   ;;  %s1170_s3 = inlined_call_operand.hbm [shape: s32[1,8,128], index: 3, kind: output, shape index: {}]  }
   0x1   :  { %9 = vsyncpa [#allocation7], 0 }
   0x2   :  { %10 = vsyncpa [#allocation5], 0  ;;  %s829_s12 = smov [#allocation6]   ;;  %s830_s14 = smov [#allocation3]  }
   0x3   :  { %s29_s13 = sshll.u32 %s829_s12, 4  ;;  %s16_s15 = sshll.u32 %s830_s14, 4  ;;  %s30_s13 = int_to_ptr.vmem [resolvable:$true] %s29_s13  ;;  %s17_s15 = int_to_ptr.vmem [resolvable:$true] %s16_s15 }
   0x4   :  { %s751_s16 = scalar_lea.vmem %s30_s13, 128  ;;  %p756_p1 = scmp.lt.s32.totalorder %s30_s13, %s30_s13 }
   0x5   :  { %p752_p0 = scmp.ne.s32.totalorder %s30_s13, %s751_s16  ;;  %p757_p2 = scmp.lt.s32.totalorder %s751_s16, %s751_s16 }
   0x7   :  { %p758_p3 = por %p757_p2, %p756_p1 }
   0x9   :  { %p759_p4 = pnand %p758_p3, %p752_p0 }
   0xb   :  { %762 = shalt.err (!%p759_p4)
}
   0xc   :  { %32 = dma.hbm_to_vmem [thread:$0]  %s1168_s1, 128, %s30_s13, [#allocation7]  }
   0xd   :  { %s771_s19 = scalar_lea.vmem %s17_s15, 1024  ;;  %p776_p6 = scmp.lt.s32.totalorder %s17_s15, %s17_s15 }
   0xe   :  { %p772_p5 = scmp.ne.s32.totalorder %s17_s15, %s771_s19  ;;  %p777_p7 = scmp.lt.s32.totalorder %s771_s19, %s771_s19 }
  0x10   :  { %p778_p8 = por %p777_p7, %p776_p6 }
  0x12   :  { %p779_p9 = pnand %p778_p8, %p772_p5 }
  0x14   :  { %782 = shalt.err (!%p779_p9)
}
  0x15   :  { %s831_s20 = smov 128   ;;  %s832_s21 = smov 8  }
  0x16   :  { %22 = dma.hbm_to_vmem [thread:$0]  %s1167_s0, 1024, %s17_s15, [#allocation4], %s831_s20, %s831_s20, %s832_s21  }
  0x17   :  { %s833_s24 = smov [#allocation8]  }
  0x18   :  { %s38_s25 = sshll.u32 %s833_s24, 4  ;;  %s39_s25 = int_to_ptr.vmem [resolvable:$true] %s38_s25 }
  0x19   :  { %s791_s26 = scalar_lea.vmem %s39_s25, 128  ;;  %p796_p11 = scmp.lt.s32.totalorder %s39_s25, %s39_s25 }
  0x1a   :  { %p792_p10 = scmp.ne.s32.totalorder %s39_s25, %s791_s26  ;;  %p797_p12 = scmp.lt.s32.totalorder %s791_s26, %s791_s26 }
  0x1c   :  { %p798_p13 = por %p797_p12, %p796_p11 }
  0x1e   :  { %p799_p0 = pnand %p798_p13, %p792_p10 }
  0x20   :  { %802 = shalt.err (!%p799_p0)
}
  0x21   :  { %s834_s1 = smov 16   ;;  %s835_s27 = smov 1  }
  0x22   :  { %44 = dma.hbm_to_vmem [thread:$0]  %s1169_s2, 128, %s39_s25, [#allocation7], %s834_s1, %s834_s1, %s835_s27  }
  0x23   :  { %823 = dma.done.wait [#allocation4], 1024  }
  0x24   :  { %824 = vsyncadd [#allocation4], 4294966272 }
  0x25   :  { %825 = dma.done.wait [#allocation7], 256  }
  0x26   :  { %826 = vsyncadd [#allocation7], 4294967040  ;;  %v55_v0 = vlaneseq  ;;  %v836_v2 = vmov 0   ;;  %v54_v7 = vld [vmem:[#allocation6] sm:$0xff]  ;;  %v177_v26 = vld [vmem:[#allocation8 + $0x1] sm:$0x1] }
  0x27   :  { %714 = vst [vmem:[#allocation9] sm:$0x1] %v836_v2  ;;  %v113_v20 = vld [vmem:[#allocation3] sm:$0xff]  ;;  %vm178_vm0 = vcmp.ne.s32.totalorder %v177_v26, 0  ;;  %v837_v51 = vmov 2   ;;  %v838_v54 = vmov 6  }
  0x28   :  { %v870_v1 = vshrl.u32 %v55_v0, 7  ;;  %v179_v38 = vsel %vm178_vm0, 1, %v836_v2  ;;  %v252_v56 = vld [vmem:[#allocation8 + $0x2] sm:$0x1]  ;;  %v839_v58 = vmov 4   ;;  %s840_s0 = smov [#allocation9]  }
  0x29   :  { %v188_v63 = vld [vmem:[#allocation3 + $0x8] sm:$0xff]  ;;  %vm253_vm8 = vcmp.ne.s32.totalorder %v252_v56, 0  ;;  %s721_s2 = sshll.u32 %s840_s0, 4  ;;  %s722_s2 = int_to_ptr.vmem [resolvable:$true] %s721_s2 }
  0x2a   :  { %v874_v3 = vsub.s32 6, %v870_v1  ;;  %v877_v4 = vsub.s32 1, %v870_v1  ;;  %v880_v5 = vsub.s32 2, %v870_v1  ;;  %v883_v6 = vsub.s32 0, %v870_v1  ;;  %s803_s30 = scalar_lea.vmem %s722_s2, 128  ;;  %p808_p2 = scmp.lt.s32.totalorder %s722_s2, %s722_s2 }
  0x2b   :  { %v890_v12 = vsub.s32 4, %v870_v1  ;;  %v893_v13 = vsub.s32 3, %v870_v1  ;;  %v898_v16 = vsub.s32 7, %v870_v1  ;;  %v901_v17 = vsub.s32 5, %v870_v1  ;;  %p804_p1 = scmp.ne.s32.totalorder %s722_s2, %s803_s30  ;;  %p809_p3 = scmp.lt.s32.totalorder %s803_s30, %s803_s30 }
  0x2c   :  { %v100_v8 = vrot.slane %v54_v7, %v874_v3  ;;  %v65_v9 = vrot.slane %v54_v7, %v877_v4  ;;  %v72_v10 = vrot.slane %v54_v7, %v880_v5  ;;  %v58_v11 = vrot.slane %v54_v7, %v883_v6 }
  0x2d   :  { %v86_v14 = vrot.slane %v54_v7, %v890_v12  ;;  %v79_v15 = vrot.slane %v54_v7, %v893_v13  ;;  %v107_v18 = vrot.slane %v54_v7, %v898_v16  ;;  %v93_v19 = vrot.slane %v54_v7, %v901_v17  ;;  %p810_p4 = por %p809_p3, %p808_p2 }
  0x2e   :  { %102 = vbcast.lane.b32.xlu0 %v100_v8, 256  ;;  %67 = vbcast.lane.b32.xlu1 %v65_v9, 256  ;;  %v183_v44 = vrot.slane %v179_v38, %v883_v6 }
  0x2f   :  { %p811_p5 = pnand %p810_p4, %p804_p1 }
  0x30   :  { %vm944_vm6 = vcmp.eq.s32.totalorder %v183_v44, 1 }
  0x32   :  { %74 = vbcast.lane.b32.xlu1 %v72_v10, 256  ;;  %60 = vbcast.lane.b32.xlu0 %v58_v11, 256 }
  0x36   :  { %88 = vbcast.lane.b32.xlu1 %v86_v14, 256  ;;  %81 = vbcast.lane.b32.xlu0 %v79_v15, 256  ;;  %v254_v15 = vsel %vm253_vm8, 1, %v836_v2 }
  0x3a   :  { %109 = vbcast.lane.b32.xlu1 %v107_v18, 256  ;;  %95 = vbcast.lane.b32.xlu0 %v93_v19, 256 }
  0xa0   :  { %v905_v21 = vpop.permute.xlu0 %102  ;;  %v907_v22 = vpop.permute.xlu1 %67 }
  0xa1   :  { %v114_v23 = vadd.f32 %v113_v20, %v905_v21 }
  0xa3   :  { %v123_v24 = vrot.slane %v114_v23, %v877_v4  ;;  %v118_v25 = vrot.slane %v114_v23, %v883_v6  ;;  %v128_v29 = vrot.slane %v114_v23, %v880_v5  ;;  %v133_v32 = vrot.slane %v114_v23, %v893_v13 }
  0xa4   :  { %v912_v27 = vpop.permute.xlu1 %74  ;;  %v914_v28 = vpop.permute.xlu0 %60  ;;  %v148_v37 = vrot.slane %v114_v23, %v874_v3  ;;  %v138_v39 = vrot.slane %v114_v23, %v890_v12  ;;  %v153_v40 = vrot.slane %v114_v23, %v898_v16  ;;  %v143_v41 = vrot.slane %v114_v23, %v901_v17 }
  0xa5   :  { %v124_v30 = vadd.f32 %v123_v24, %v907_v22  ;;  %v119_v31 = vadd.f32 %v118_v25, %v914_v28  ;;  %v129_v35 = vadd.f32 %v128_v29, %v912_v27 }
  0xa6   :  { %v149_v47 = vadd.f32 %v148_v37, %v905_v21 }
  0xa7   :  { %vm155_vm1 = vcmp.gt.f32.partialorder %v124_v30, %v119_v31 }
  0xa8   :  { %v920_v33 = vpop.permute.xlu1 %88  ;;  %v922_v34 = vpop.permute.xlu0 %81  ;;  %v156_v50 = vsel %vm155_vm1, %v124_v30, %v119_v31  ;;  %v157_v61 = vsel %vm155_vm1, 1, %v836_v2 }
  0xa9   :  { %v134_v36 = vadd.f32 %v133_v32, %v922_v34  ;;  %v139_v46 = vadd.f32 %v138_v39, %v920_v33 }
  0xab   :  { %vm158_vm2 = vcmp.gt.f32.partialorder %v134_v36, %v129_v35 }
  0xac   :  { %v159_v42 = vsel %vm158_vm2, %v134_v36, %v129_v35  ;;  %v931_v43 = vpop.permute.xlu1 %109  ;;  %v934_v45 = vpop.permute.xlu0 %95  ;;  %v160_v52 = vsel %vm158_vm2, 3, %v837_v51 }
  0xad   :  { %v154_v48 = vadd.f32 %v153_v40, %v931_v43  ;;  %v144_v49 = vadd.f32 %v143_v41, %v934_v45  ;;  %vm167_vm3 = vcmp.gt.f32.partialorder %v159_v42, %v156_v50  ;;  %v258_v40 = vrot.slane %v254_v15, %v883_v6 }
  0xae   :  { %v168_v62 = vsel %vm167_vm3, %v159_v42, %v156_v50  ;;  %v169_v8 = vsel %vm167_vm3, %v160_v52, %v157_v61 }
  0xaf   :  { %vm164_vm4 = vcmp.gt.f32.partialorder %v154_v48, %v149_v47  ;;  %vm161_vm5 = vcmp.gt.f32.partialorder %v144_v49, %v139_v46  ;;  %vm979_vm0 = vcmp.eq.s32.totalorder %v258_v40, 1 }
  0xb0   :  { %v165_v53 = vsel %vm164_vm4, %v154_v48, %v149_v47  ;;  %v166_v55 = vsel %vm164_vm4, 7, %v838_v54  ;;  %v162_v57 = vsel %vm161_vm5, %v144_v49, %v139_v46  ;;  %v163_v59 = vsel %vm161_vm5, 5, %v839_v58  ;;  %v328_v47 = vld [vmem:[#allocation8 + $0x3] sm:$0x1] }
  0xb1   :  { %vm170_vm7 = vcmp.gt.f32.partialorder %v165_v53, %v162_v57  ;;  %vm329_vm1 = vcmp.ne.s32.totalorder %v328_v47, 0 }
  0xb2   :  { %v171_v0 = vsel %vm170_vm7, %v165_v53, %v162_v57  ;;  %v172_v7 = vsel %vm170_vm7, %v166_v55, %v163_v59  ;;  %v264_v57 = vld [vmem:[#allocation3 + $0x10] sm:$0xff] }
  0xb3   :  { %vm173_vm9 = vcmp.gt.f32.partialorder %v171_v0, %v168_v62 }
  0xb4   :  { %v174_v9 = vsel %vm173_vm9, %v171_v0, %v168_v62  ;;  %v952_v10 = vsel %vm173_vm9, %v172_v7, %v169_v8  ;;  %v330_v8 = vsel %vm329_vm1, 1, %v836_v2 }
  0xb5   :  { %v185_v11 = vsel %vm944_vm6, %v952_v10, 0  ;;  %v189_v14 = vadd.f32 %v188_v63, %v174_v9 }
  0xb7   :  { %v193_v18 = vrot.slane %v189_v14, %v883_v6  ;;  %v198_v19 = vrot.slane %v189_v14, %v877_v4  ;;  %v203_v20 = vrot.slane %v189_v14, %v880_v5  ;;  %v208_v23 = vrot.slane %v189_v14, %v893_v13 }
  0xb8   :  { %v213_v24 = vrot.slane %v189_v14, %v890_v12  ;;  %v218_v25 = vrot.slane %v189_v14, %v901_v17  ;;  %v223_v26 = vrot.slane %v189_v14, %v874_v3  ;;  %v228_v29 = vrot.slane %v189_v14, %v898_v16 }
  0xb9   :  { %v194_v30 = vadd.f32 %v193_v18, %v914_v28  ;;  %v199_v31 = vadd.f32 %v198_v19, %v907_v22  ;;  %v204_v32 = vadd.f32 %v203_v20, %v912_v27  ;;  %v209_v35 = vadd.f32 %v208_v23, %v922_v34 }
  0xba   :  { %v214_v36 = vadd.f32 %v213_v24, %v920_v33  ;;  %v219_v37 = vadd.f32 %v218_v25, %v934_v45  ;;  %v224_v38 = vadd.f32 %v223_v26, %v905_v21  ;;  %v229_v39 = vadd.f32 %v228_v29, %v931_v43 }
  0xbb   :  { %vm230_vm10 = vcmp.gt.f32.partialorder %v199_v31, %v194_v30  ;;  %vm233_vm11 = vcmp.gt.f32.partialorder %v209_v35, %v204_v32 }
  0xbc   :  { %v231_v41 = vsel %vm230_vm10, %v199_v31, %v194_v30  ;;  %v232_v42 = vsel %vm230_vm10, 1, %v836_v2  ;;  %v234_v44 = vsel %vm233_vm11, %v209_v35, %v204_v32  ;;  %v235_v46 = vsel %vm233_vm11, 3, %v837_v51 }
  0xbd   :  { %vm236_vm12 = vcmp.gt.f32.partialorder %v219_v37, %v214_v36  ;;  %vm239_vm13 = vcmp.gt.f32.partialorder %v229_v39, %v224_v38  ;;  %vm242_vm14 = vcmp.gt.f32.partialorder %v234_v44, %v231_v41 }
  0xbe   :  { %v237_v48 = vsel %vm236_vm12, %v219_v37, %v214_v36  ;;  %v238_v49 = vsel %vm236_vm12, 5, %v839_v58  ;;  %v240_v50 = vsel %vm239_vm13, %v229_v39, %v224_v38  ;;  %v241_v52 = vsel %vm239_vm13, 7, %v838_v54 }
  0xbf   :  { %v243_v53 = vsel %vm242_vm14, %v234_v44, %v231_v41  ;;  %v244_v55 = vsel %vm242_vm14, %v235_v46, %v232_v42  ;;  %vm245_vm15 = vcmp.gt.f32.partialorder %v240_v50, %v237_v48  ;;  %v334_v37 = vrot.slane %v330_v8, %v883_v6  ;;  %v404_v42 = vld [vmem:[#allocation8 + $0x4] sm:$0x1] }
  0xc0   :  { %v246_v59 = vsel %vm245_vm15, %v240_v50, %v237_v48  ;;  %v247_v61 = vsel %vm245_vm15, %v241_v52, %v238_v49  ;;  %vm405_vm11 = vcmp.ne.s32.totalorder %v404_v42, 0  ;;  %v480_v42 = vld [vmem:[#allocation8 + $0x5] sm:$0x1] }
  0xc1   :  { %vm248_vm2 = vcmp.gt.f32.partialorder %v246_v59, %v243_v53  ;;  %vm1010_vm10 = vcmp.eq.s32.totalorder %v334_v37, 1  ;;  %v406_v8 = vsel %vm405_vm11, 1, %v836_v2 }
  0xc2   :  { %v249_v62 = vsel %vm248_vm2, %v246_v59, %v243_v53  ;;  %v983_v63 = vsel %vm248_vm2, %v247_v61, %v244_v55  ;;  %v340_v53 = vld [vmem:[#allocation3 + $0x18] sm:$0xff]  ;;  %v410_v37 = vrot.slane %v406_v8, %v883_v6 }
  0xc3   :  { %v260_v0 = vsel %vm979_vm0, %v983_v63, 0  ;;  %v265_v7 = vadd.f32 %v264_v57, %v249_v62 }
  0xc5   :  { %v269_v9 = vrot.slane %v265_v7, %v883_v6  ;;  %v274_v14 = vrot.slane %v265_v7, %v877_v4  ;;  %v279_v15 = vrot.slane %v265_v7, %v880_v5  ;;  %v284_v18 = vrot.slane %v265_v7, %v893_v13 }
  0xc6   :  { %v289_v19 = vrot.slane %v265_v7, %v890_v12  ;;  %v294_v20 = vrot.slane %v265_v7, %v901_v17  ;;  %v299_v23 = vrot.slane %v265_v7, %v874_v3  ;;  %v304_v24 = vrot.slane %v265_v7, %v898_v16 }
  0xc7   :  { %v270_v25 = vadd.f32 %v269_v9, %v914_v28  ;;  %v275_v26 = vadd.f32 %v274_v14, %v907_v22  ;;  %v280_v29 = vadd.f32 %v279_v15, %v912_v27  ;;  %v285_v30 = vadd.f32 %v284_v18, %v922_v34 }
  0xc8   :  { %v290_v31 = vadd.f32 %v289_v19, %v920_v33  ;;  %v295_v32 = vadd.f32 %v294_v20, %v934_v45  ;;  %v300_v35 = vadd.f32 %v299_v23, %v905_v21  ;;  %v305_v36 = vadd.f32 %v304_v24, %v931_v43 }
  0xc9   :  { %vm306_vm3 = vcmp.gt.f32.partialorder %v275_v26, %v270_v25  ;;  %vm309_vm4 = vcmp.gt.f32.partialorder %v285_v30, %v280_v29 }
  0xca   :  { %v307_v38 = vsel %vm306_vm3, %v275_v26, %v270_v25  ;;  %v308_v39 = vsel %vm306_vm3, 1, %v836_v2  ;;  %v310_v40 = vsel %vm309_vm4, %v285_v30, %v280_v29  ;;  %v311_v41 = vsel %vm309_vm4, 3, %v837_v51 }
  0xcb   :  { %vm312_vm5 = vcmp.gt.f32.partialorder %v295_v32, %v290_v31  ;;  %vm315_vm7 = vcmp.gt.f32.partialorder %v305_v36, %v300_v35  ;;  %vm318_vm8 = vcmp.gt.f32.partialorder %v310_v40, %v307_v38  ;;  %vm1041_vm4 = vcmp.eq.s32.totalorder %v410_v37, 1 }
  0xcc   :  { %v313_v44 = vsel %vm312_vm5, %v295_v32, %v290_v31  ;;  %v314_v46 = vsel %vm312_vm5, 5, %v839_v58  ;;  %v316_v47 = vsel %vm315_vm7, %v305_v36, %v300_v35  ;;  %v317_v48 = vsel %vm315_vm7, 7, %v838_v54 }
  0xcd   :  { %v319_v49 = vsel %vm318_vm8, %v310_v40, %v307_v38  ;;  %v320_v50 = vsel %vm318_vm8, %v311_v41, %v308_v39  ;;  %vm321_vm9 = vcmp.gt.f32.partialorder %v316_v47, %v313_v44  ;;  %vm481_vm5 = vcmp.ne.s32.totalorder %v480_v42, 0 }
  0xce   :  { %v322_v55 = vsel %vm321_vm9, %v316_v47, %v313_v44  ;;  %v323_v57 = vsel %vm321_vm9, %v317_v48, %v314_v46 }
  0xcf   :  { %vm324_vm12 = vcmp.gt.f32.partialorder %v322_v55, %v319_v49 }
  0xd0   :  { %v325_v59 = vsel %vm324_vm12, %v322_v55, %v319_v49  ;;  %v1014_v61 = vsel %vm324_vm12, %v323_v57, %v320_v50  ;;  %v416_v55 = vld [vmem:[#allocation3 + $0x20] sm:$0xff] }
  0xd1   :  { %v336_v62 = vsel %vm1010_vm10, %v1014_v61, 0  ;;  %v341_v7 = vadd.f32 %v340_v53, %v325_v59 }
  0xd3   :  { %v345_v9 = vrot.slane %v341_v7, %v883_v6  ;;  %v350_v14 = vrot.slane %v341_v7, %v877_v4  ;;  %v355_v15 = vrot.slane %v341_v7, %v880_v5  ;;  %v360_v18 = vrot.slane %v341_v7, %v893_v13 }
  0xd4   :  { %v365_v19 = vrot.slane %v341_v7, %v890_v12  ;;  %v370_v20 = vrot.slane %v341_v7, %v901_v17  ;;  %v375_v23 = vrot.slane %v341_v7, %v874_v3  ;;  %v380_v24 = vrot.slane %v341_v7, %v898_v16 }
  0xd5   :  { %v346_v25 = vadd.f32 %v345_v9, %v914_v28  ;;  %v351_v26 = vadd.f32 %v350_v14, %v907_v22  ;;  %v356_v29 = vadd.f32 %v355_v15, %v912_v27  ;;  %v361_v30 = vadd.f32 %v360_v18, %v922_v34 }
  0xd6   :  { %v366_v31 = vadd.f32 %v365_v19, %v920_v33  ;;  %v371_v32 = vadd.f32 %v370_v20, %v934_v45  ;;  %v376_v35 = vadd.f32 %v375_v23, %v905_v21  ;;  %v381_v36 = vadd.f32 %v380_v24, %v931_v43 }
  0xd7   :  { %vm382_vm13 = vcmp.gt.f32.partialorder %v351_v26, %v346_v25  ;;  %vm385_vm14 = vcmp.gt.f32.partialorder %v361_v30, %v356_v29  ;;  %v482_v15 = vsel %vm481_vm5, 1, %v836_v2 }
  0xd8   :  { %v383_v38 = vsel %vm382_vm13, %v351_v26, %v346_v25  ;;  %v384_v39 = vsel %vm382_vm13, 1, %v836_v2  ;;  %v386_v40 = vsel %vm385_vm14, %v361_v30, %v356_v29  ;;  %v387_v41 = vsel %vm385_vm14, 3, %v837_v51 }
  0xd9   :  { %vm388_vm15 = vcmp.gt.f32.partialorder %v371_v32, %v366_v31  ;;  %vm391_vm1 = vcmp.gt.f32.partialorder %v381_v36, %v376_v35  ;;  %vm394_vm2 = vcmp.gt.f32.partialorder %v386_v40, %v383_v38 }
  0xda   :  { %v389_v44 = vsel %vm388_vm15, %v371_v32, %v366_v31  ;;  %v390_v46 = vsel %vm388_vm15, 5, %v839_v58  ;;  %v392_v47 = vsel %vm391_vm1, %v381_v36, %v376_v35  ;;  %v393_v48 = vsel %vm391_vm1, 7, %v838_v54 }
  0xdb   :  { %v395_v49 = vsel %vm394_vm2, %v386_v40, %v383_v38  ;;  %v396_v50 = vsel %vm394_vm2, %v387_v41, %v384_v39  ;;  %vm397_vm3 = vcmp.gt.f32.partialorder %v392_v47, %v389_v44  ;;  %v486_v40 = vrot.slane %v482_v15, %v883_v6 }
  0xdc   :  { %v398_v57 = vsel %vm397_vm3, %v392_v47, %v389_v44  ;;  %v399_v59 = vsel %vm397_vm3, %v393_v48, %v390_v46  ;;  %v556_v47 = vld [vmem:[#allocation8 + $0x6] sm:$0x1] }
  0xdd   :  { %vm400_vm7 = vcmp.gt.f32.partialorder %v398_v57, %v395_v49  ;;  %vm1072_vm15 = vcmp.eq.s32.totalorder %v486_v40, 1  ;;  %vm557_vm1 = vcmp.ne.s32.totalorder %v556_v47, 0 }
  0xde   :  { %v401_v7 = vsel %vm400_vm7, %v398_v57, %v395_v49  ;;  %v1045_v8 = vsel %vm400_vm7, %v399_v59, %v396_v50 }
  0xdf   :  { %v412_v9 = vsel %vm1041_vm4, %v1045_v8, 0  ;;  %v417_v14 = vadd.f32 %v416_v55, %v401_v7 }
  0xe1   :  { %v421_v18 = vrot.slane %v417_v14, %v883_v6  ;;  %v426_v19 = vrot.slane %v417_v14, %v877_v4  ;;  %v431_v20 = vrot.slane %v417_v14, %v880_v5  ;;  %v436_v23 = vrot.slane %v417_v14, %v893_v13 }
  0xe2   :  { %v441_v24 = vrot.slane %v417_v14, %v890_v12  ;;  %v446_v25 = vrot.slane %v417_v14, %v901_v17  ;;  %v451_v26 = vrot.slane %v417_v14, %v874_v3  ;;  %v456_v29 = vrot.slane %v417_v14, %v898_v16  ;;  %v492_v14 = vld [vmem:[#allocation3 + $0x28] sm:$0xff] }
  0xe3   :  { %v422_v30 = vadd.f32 %v421_v18, %v914_v28  ;;  %v427_v31 = vadd.f32 %v426_v19, %v907_v22  ;;  %v432_v32 = vadd.f32 %v431_v20, %v912_v27  ;;  %v437_v35 = vadd.f32 %v436_v23, %v922_v34 }
  0xe4   :  { %v442_v36 = vadd.f32 %v441_v24, %v920_v33  ;;  %v447_v37 = vadd.f32 %v446_v25, %v934_v45  ;;  %v452_v38 = vadd.f32 %v451_v26, %v905_v21  ;;  %v457_v39 = vadd.f32 %v456_v29, %v931_v43 }
  0xe5   :  { %vm458_vm8 = vcmp.gt.f32.partialorder %v427_v31, %v422_v30  ;;  %vm461_vm9 = vcmp.gt.f32.partialorder %v437_v35, %v432_v32  ;;  %v558_v25 = vsel %vm557_vm1, 1, %v836_v2 }
  0xe6   :  { %v459_v41 = vsel %vm458_vm8, %v427_v31, %v422_v30  ;;  %v460_v42 = vsel %vm458_vm8, 1, %v836_v2  ;;  %v462_v44 = vsel %vm461_vm9, %v437_v35, %v432_v32  ;;  %v463_v46 = vsel %vm461_vm9, 3, %v837_v51 }
  0xe7   :  { %vm464_vm11 = vcmp.gt.f32.partialorder %v447_v37, %v442_v36  ;;  %vm467_vm12 = vcmp.gt.f32.partialorder %v457_v39, %v452_v38  ;;  %vm470_vm13 = vcmp.gt.f32.partialorder %v462_v44, %v459_v41 }
  0xe8   :  { %v465_v48 = vsel %vm464_vm11, %v447_v37, %v442_v36  ;;  %v466_v49 = vsel %vm464_vm11, 5, %v839_v58  ;;  %v468_v50 = vsel %vm467_vm12, %v457_v39, %v452_v38  ;;  %v469_v55 = vsel %vm467_vm12, 7, %v838_v54 }
  0xe9   :  { %v471_v57 = vsel %vm470_vm13, %v462_v44, %v459_v41  ;;  %v472_v59 = vsel %vm470_vm13, %v463_v46, %v460_v42  ;;  %vm473_vm14 = vcmp.gt.f32.partialorder %v468_v50, %v465_v48 }
  0xea   :  { %v474_v15 = vsel %vm473_vm14, %v468_v50, %v465_v48  ;;  %v475_v18 = vsel %vm473_vm14, %v469_v55, %v466_v49  ;;  %v562_v48 = vrot.slane %v558_v25, %v883_v6 }
  0xeb   :  { %vm476_vm2 = vcmp.gt.f32.partialorder %v474_v15, %v471_v57 }
  0xec   :  { %v477_v19 = vsel %vm476_vm2, %v474_v15, %v471_v57  ;;  %v1076_v20 = vsel %vm476_vm2, %v475_v18, %v472_v59  ;;  %v631_v59 = vld [vmem:[#allocation8 + $0x7] sm:$0x1]  ;;  %vm1103_vm12 = vcmp.eq.s32.totalorder %v562_v48, 1 }
  0xed   :  { %v488_v23 = vsel %vm1072_vm15, %v1076_v20, 0  ;;  %v493_v24 = vadd.f32 %v492_v14, %v477_v19  ;;  %vm632_vm13 = vcmp.ne.s32.totalorder %v631_v59, 0 }
  0xef   :  { %v497_v26 = vrot.slane %v493_v24, %v883_v6  ;;  %v502_v29 = vrot.slane %v493_v24, %v877_v4  ;;  %v507_v30 = vrot.slane %v493_v24, %v880_v5  ;;  %v512_v31 = vrot.slane %v493_v24, %v893_v13 }
  0xf0   :  { %v517_v32 = vrot.slane %v493_v24, %v890_v12  ;;  %v522_v35 = vrot.slane %v493_v24, %v901_v17  ;;  %v527_v36 = vrot.slane %v493_v24, %v874_v3  ;;  %v532_v37 = vrot.slane %v493_v24, %v898_v16 }
  0xf1   :  { %v498_v38 = vadd.f32 %v497_v26, %v914_v28  ;;  %v503_v39 = vadd.f32 %v502_v29, %v907_v22  ;;  %v508_v40 = vadd.f32 %v507_v30, %v912_v27  ;;  %v513_v41 = vadd.f32 %v512_v31, %v922_v34  ;;  %v568_v29 = vld [vmem:[#allocation3 + $0x30] sm:$0xff] }
  0xf2   :  { %v518_v42 = vadd.f32 %v517_v32, %v920_v33  ;;  %v523_v44 = vadd.f32 %v522_v35, %v934_v45  ;;  %v528_v46 = vadd.f32 %v527_v36, %v905_v21  ;;  %v533_v47 = vadd.f32 %v532_v37, %v931_v43 }
  0xf3   :  { %vm534_vm3 = vcmp.gt.f32.partialorder %v503_v39, %v498_v38  ;;  %vm537_vm5 = vcmp.gt.f32.partialorder %v513_v41, %v508_v40 }
  0xf4   :  { %v535_v49 = vsel %vm534_vm3, %v503_v39, %v498_v38  ;;  %v536_v50 = vsel %vm534_vm3, 1, %v836_v2  ;;  %v538_v55 = vsel %vm537_vm5, %v513_v41, %v508_v40  ;;  %v539_v57 = vsel %vm537_vm5, 3, %v837_v51 }
  0xf5   :  { %vm540_vm7 = vcmp.gt.f32.partialorder %v523_v44, %v518_v42  ;;  %vm543_vm8 = vcmp.gt.f32.partialorder %v533_v47, %v528_v46  ;;  %vm546_vm9 = vcmp.gt.f32.partialorder %v538_v55, %v535_v49  ;;  %v633_v38 = vsel %vm632_vm13, 1, %v836_v2 }
  0xf6   :  { %v541_v14 = vsel %vm540_vm7, %v523_v44, %v518_v42  ;;  %v542_v15 = vsel %vm540_vm7, 5, %v839_v58  ;;  %v544_v18 = vsel %vm543_vm8, %v533_v47, %v528_v46  ;;  %v545_v19 = vsel %vm543_vm8, 7, %v838_v54 }
  0xf7   :  { %v547_v24 = vsel %vm546_vm9, %v538_v55, %v535_v49  ;;  %v548_v25 = vsel %vm546_vm9, %v539_v57, %v536_v50  ;;  %vm549_vm11 = vcmp.gt.f32.partialorder %v544_v18, %v541_v14 }
  0xf8   :  { %v550_v30 = vsel %vm549_vm11, %v544_v18, %v541_v14  ;;  %v551_v31 = vsel %vm549_vm11, %v545_v19, %v542_v15 }
  0xf9   :  { %vm552_vm14 = vcmp.gt.f32.partialorder %v550_v30, %v547_v24 }
  0xfa   :  { %v553_v32 = vsel %vm552_vm14, %v550_v30, %v547_v24  ;;  %v554_v35 = vsel %vm552_vm14, %v551_v31, %v548_v25 }
  0xfb   :  { %v564_v36 = vsel %vm1103_vm12, %v554_v35, 0  ;;  %v569_v37 = vadd.f32 %v568_v29, %v553_v32 }
  0xfd   :  { %v573_v39 = vrot.slane %v569_v37, %v883_v6  ;;  %v578_v40 = vrot.slane %v569_v37, %v877_v4  ;;  %v583_v41 = vrot.slane %v569_v37, %v880_v5  ;;  %v588_v42 = vrot.slane %v569_v37, %v893_v13 }
  0xfe   :  { %v593_v44 = vrot.slane %v569_v37, %v890_v12  ;;  %v598_v46 = vrot.slane %v569_v37, %v901_v17  ;;  %v603_v47 = vrot.slane %v569_v37, %v874_v3  ;;  %v608_v48 = vrot.slane %v569_v37, %v898_v16 }
  0xff   :  { %v574_v49 = vadd.f32 %v573_v39, %v914_v28  ;;  %v579_v50 = vadd.f32 %v578_v40, %v907_v22  ;;  %v584_v55 = vadd.f32 %v583_v41, %v912_v27  ;;  %v589_v4 = vadd.f32 %v588_v42, %v922_v34 }
 0x100   :  { %v594_v5 = vadd.f32 %v593_v44, %v920_v33  ;;  %v599_v13 = vadd.f32 %v598_v46, %v934_v45  ;;  %v604_v12 = vadd.f32 %v603_v47, %v905_v21  ;;  %v609_v17 = vadd.f32 %v608_v48, %v931_v43 }
 0x101   :  { %v637_v3 = vrot.slane %v633_v38, %v883_v6  ;;  %vm610_vm1 = vcmp.gt.f32.partialorder %v579_v50, %v574_v49  ;;  %vm613_vm2 = vcmp.gt.f32.partialorder %v589_v4, %v584_v55 }
 0x102   :  { %v611_v16 = vsel %vm610_vm1, %v579_v50, %v574_v49  ;;  %v612_v28 = vsel %vm610_vm1, 1, %v836_v2  ;;  %v614_v22 = vsel %vm613_vm2, %v589_v4, %v584_v55  ;;  %v615_v27 = vsel %vm613_vm2, 3, %v837_v51 }
 0x103   :  { %vm616_vm3 = vcmp.gt.f32.partialorder %v599_v13, %v594_v5  ;;  %vm619_vm5 = vcmp.gt.f32.partialorder %v609_v17, %v604_v12  ;;  %vm622_vm7 = vcmp.gt.f32.partialorder %v614_v22, %v611_v16  ;;  %vm638_vm9 = vcmp.eq.s32.totalorder %v637_v3, 1 }
 0x104   :  { %v617_v33 = vsel %vm616_vm3, %v599_v13, %v594_v5  ;;  %v618_v34 = vsel %vm616_vm3, 5, %v839_v58  ;;  %v620_v45 = vsel %vm619_vm5, %v609_v17, %v604_v12  ;;  %v621_v21 = vsel %vm619_vm5, 7, %v838_v54 }
 0x105   :  { %v623_v43 = vsel %vm622_vm7, %v614_v22, %v611_v16  ;;  %v624_v57 = vsel %vm622_vm7, %v615_v27, %v612_v28  ;;  %vm625_vm8 = vcmp.gt.f32.partialorder %v620_v45, %v617_v33 }
 0x106   :  { %v626_v59 = vsel %vm625_vm8, %v620_v45, %v617_v33  ;;  %v627_v14 = vsel %vm625_vm8, %v621_v21, %v618_v34 }
 0x107   :  { %vm628_vm11 = vcmp.gt.f32.partialorder %v626_v59, %v623_v43 }
 0x108   :  { %v629_v15 = vsel %vm628_vm11, %v627_v14, %v624_v57 }
 0x109   :  { %v639_v18 = vsel %vm638_vm9, %v629_v15, 0 }
 0x10a   :  { %641 = vst [vmem:[#allocation2 + $0x30] sm:$0xff] %v639_v18 }
 0x111   :  { %v642_v51 = vld [vmem:[#allocation2 + $0x37] sm:$0x1] }
 0x112   :  { %643 = vst [vmem:[#allocation9 + $0x7] sm:$0x1] %v642_v51  ;;  %v648_v19 = vrot.slane %v642_v51, %v883_v6 }
 0x114   :  { %vm649_vm12 = vcmp.eq.s32.totalorder %v870_v1, %v648_v19 }
 0x115   :  { %v650_v58 = vsel %vm649_vm12, 1, %v836_v2 }
 0x116   :  { %v651_v24 = vmul.u32 %v650_v58, %v564_v36 }
 0x118   :  { %v652_v54 = vrot.slane %v651_v24, 4 }
 0x11a   :  { %v653_v25 = vadd.s32 %v652_v54, %v651_v24 }
 0x11c   :  { %v654_v26 = vrot.slane %v653_v25, 2 }
 0x11e   :  { %v655_v29 = vadd.s32 %v654_v26, %v653_v25 }
 0x120   :  { %v656_v30 = vrot.slane %v655_v29, 1 }
 0x122   :  { %v657_v31 = vadd.s32 %v656_v30, %v655_v29 }
 0x124   :  { %658 = vst [vmem:[#allocation9 + $0x6] sm:$0x1] %v657_v31  ;;  %vm660_vm13 = vcmp.eq.s32.totalorder %v870_v1, %v657_v31 }
 0x125   :  { %v661_v32 = vsel %vm660_vm13, 1, %v836_v2 }
 0x126   :  { %v662_v6 = vmul.u32 %v661_v32, %v488_v23 }
 0x128   :  { %v663_v35 = vrot.slane %v662_v6, 4 }
 0x12a   :  { %v664_v37 = vadd.s32 %v663_v35, %v662_v6 }
 0x12c   :  { %v665_v38 = vrot.slane %v664_v37, 2 }
 0x12e   :  { %v666_v36 = vadd.s32 %v665_v38, %v664_v37 }
 0x130   :  { %v667_v39 = vrot.slane %v666_v36, 1 }
 0x132   :  { %v668_v40 = vadd.s32 %v667_v39, %v666_v36 }
 0x134   :  { %669 = vst [vmem:[#allocation9 + $0x5] sm:$0x1] %v668_v40  ;;  %vm671_vm14 = vcmp.eq.s32.totalorder %v870_v1, %v668_v40 }
 0x135   :  { %v672_v41 = vsel %vm671_vm14, 1, %v836_v2 }
 0x136   :  { %v673_v42 = vmul.u32 %v672_v41, %v412_v9 }
 0x138   :  { %v674_v7 = vrot.slane %v673_v42, 4 }
 0x13a   :  { %v675_v44 = vadd.s32 %v674_v7, %v673_v42 }
 0x13c   :  { %v676_v20 = vrot.slane %v675_v44, 2 }
 0x13e   :  { %v677_v23 = vadd.s32 %v676_v20, %v675_v44 }
 0x140   :  { %v678_v46 = vrot.slane %v677_v23, 1 }
 0x142   :  { %v679_v47 = vadd.s32 %v678_v46, %v677_v23 }
 0x144   :  { %680 = vst [vmem:[#allocation9 + $0x4] sm:$0x1] %v679_v47  ;;  %vm682_vm15 = vcmp.eq.s32.totalorder %v870_v1, %v679_v47 }
 0x145   :  { %v683_v48 = vsel %vm682_vm15, 1, %v836_v2 }
 0x146   :  { %v684_v49 = vmul.u32 %v683_v48, %v336_v62 }
 0x148   :  { %v685_v53 = vrot.slane %v684_v49, 4 }
 0x14a   :  { %v686_v50 = vadd.s32 %v685_v53, %v684_v49 }
 0x14c   :  { %v687_v8 = vrot.slane %v686_v50, 2 }
 0x14e   :  { %v688_v9 = vadd.s32 %v687_v8, %v686_v50 }
 0x150   :  { %v689_v55 = vrot.slane %v688_v9, 1 }
 0x152   :  { %v690_v4 = vadd.s32 %v689_v55, %v688_v9 }
 0x154   :  { %691 = vst [vmem:[#allocation9 + $0x3] sm:$0x1] %v690_v4  ;;  %vm693_vm4 = vcmp.eq.s32.totalorder %v870_v1, %v690_v4 }
 0x155   :  { %v694_v5 = vsel %vm693_vm4, 1, %v836_v2 }
 0x156   :  { %v695_v13 = vmul.u32 %v694_v5, %v260_v0 }
 0x158   :  { %v696_v52 = vrot.slane %v695_v13, 4 }
 0x15a   :  { %v697_v12 = vadd.s32 %v696_v52, %v695_v13 }
 0x15c   :  { %v698_v61 = vrot.slane %v697_v12, 2 }
 0x15e   :  { %v699_v62 = vadd.s32 %v698_v61, %v697_v12 }
 0x160   :  { %v700_v17 = vrot.slane %v699_v62, 1 }
 0x162   :  { %v701_v3 = vadd.s32 %v700_v17, %v699_v62 }
 0x164   :  { %702 = vst [vmem:[#allocation9 + $0x2] sm:$0x1] %v701_v3  ;;  %vm704_vm10 = vcmp.eq.s32.totalorder %v870_v1, %v701_v3 }
 0x165   :  { %v705_v16 = vsel %vm704_vm10, 1, %v836_v2 }
 0x166   :  { %v706_v28 = vmul.u32 %v705_v16, %v185_v11 }
 0x168   :  { %v707_v56 = vrot.slane %v706_v28, 4 }
 0x16a   :  { %v708_v22 = vadd.s32 %v707_v56, %v706_v28 }
 0x16c   :  { %v709_v63 = vrot.slane %v708_v22, 2 }
 0x16e   :  { %v710_v0 = vadd.s32 %v709_v63, %v708_v22 }
 0x170   :  { %v711_v27 = vrot.slane %v710_v0, 1 }
 0x172   :  { %v712_v33 = vadd.s32 %v711_v27, %v710_v0 }
 0x174   :  { %713 = vst [vmem:[#allocation9 + $0x1] sm:$0x1] %v712_v33 }
 0x175   :  { %814 = shalt.err (!%p811_p5)
}
 0x176   :  { %724 = dma.vmem_to_hbm [thread:$0]  %s722_s2, 128, %s1170_s3, [#allocation5]  }
 0x177   :  { %827 = dma.done.wait [#allocation5], 128  }
 0x178   :  { %828 = vsyncadd [#allocation5], 4294967168 }
 0x179   :  { %728 = vsyncpa [#allocation4], 1 }
 0x17a   :  { %729 = vsyncpa [#allocation7], 1 }
 0x17b   :  { %730 = vsyncpa [#allocation5], 1 }

</bundles_post_ra>
